<compile_context>
chip_gen: v5e
topology: v5e:2x2
jax: 0.10.0
libtpu: 0.0.40
codegen_flags: <defaults>
</compile_context>

<pallas_src>
import functools

import jax
import jax.numpy as jnp
from jax.experimental import pallas as pl
from jax.experimental.pallas import tpu as pltpu

jax.config.update("jax_default_matmul_precision", "highest")

H = 3  # LSTM hidden size is hard-coded to 3 in the PyTorch module


def _sigmoid(x):
    return 1.0 / (1.0 + jnp.exp(-x))


def _softplus(x):
    # numerically stable softplus, matches F.softplus for these magnitudes
    return jnp.maximum(x, 0.0) + jnp.log(1.0 + jnp.exp(-jnp.abs(x)))


# --------------------------------- kernel ------------------------------------
def _agent_kernel(x_ref, w1k0_ref, w1k1_ref, b1_ref, w2k0_ref, w2k1_ref, b2_ref,
                  wih_ref, bl_ref, whh_ref, wh_ref, bh_ref,
                  out_ref, hs_ref, *, B, T, A):
    """Fused actor+critic forward.

    x_ref is the input flattened to (B*T, D); row r = b*T + t holds x[b, t, :].
    Conv/pool results are kept at full time resolution: valid pool1 values sit
    at rows t = 2p and valid pool2 values at rows t = 4q of each length-T
    block.  Only rows actually needed downstream are read, so wrap-around
    garbage rows introduced by the shifts never reach a used value.
    """
    dot = functools.partial(jnp.dot, preferred_element_type=jnp.float32)

    # ---- conv1 (k=2), both branches: two whole-batch matmuls ----------------
    xv = x_ref[...]                              # (B*T, D)
    xn = jnp.roll(xv, -1, axis=0)                # row r -> x[r + 1]
    c1 = dot(xv, w1k0_ref[...]) + dot(xn, w1k1_ref[...]) + b1_ref[...]  # (B*T, 2D)

    # ---- maxpool(2): pooled value p1[p] sits at row t = 2p ------------------
    m1 = jnp.maximum(c1, jnp.roll(c1, -1, axis=0))

    # ---- conv2 (k=2) over pooled positions (partner lives 2 rows below) -----
    c2 = (dot(m1, w2k0_ref[...]) + dot(jnp.roll(m1, -2, axis=0), w2k1_ref[...])
          + b2_ref[...])                         # (B*T, 2D)

    # ---- maxpool(2): pooled value p2[q] sits at row t = 4q ------------------
    m2 = jnp.maximum(c2, jnp.roll(c2, -2, axis=0))

    # ---- LSTM input projection for every row, hoisted out of the recurrence -
    gx = dot(m2, wih_ref[...]) + bl_ref[...]     # (B*T, 8H)

    whh = whh_ref[...]                           # (2H, 8H)
    whh_rows = [whh[k:k + 1, :] for k in range(2 * H)]
    gcol = jax.lax.broadcasted_iota(jnp.int32, (1, 8 * H), 1)
    g_mask = (gcol >= 4 * H) & (gcol < 6 * H)    # tanh lanes (the "g" gate)

    lp1 = (T - 1) // 2
    lp2 = (lp1 - 1) // 2
    feat_row = 4 * (lp2 - 1)   # within-block row of the last pooled-time column

    # out[0][:, -1, :] quirk: the LSTM sequence is the batch axis B and only the
    # last pooled-time column is kept, so step s consumes block s's feature row
    # and h after step s is the head input for batch row s.
    h = jnp.zeros((1, 2 * H), jnp.float32)
    c = jnp.zeros((1, 2 * H), jnp.float32)
    for s in range(B):                           # static unroll (B is tiny)
        r = s * T + feat_row
        gates = gx[r:r + 1, :]                   # (1, 8H)
        if s > 0:
            # h @ Whh on the VPU: 2H broadcast multiply-adds, no MXU push.
            for k in range(2 * H):
                gates = gates + h[:, k:k + 1] * whh_rows[k]
        act = jnp.where(g_mask, jnp.tanh(gates), _sigmoid(gates))
        i_g = act[:, 0:2 * H]
        f_g = act[:, 2 * H:4 * H]
        g_g = act[:, 4 * H:6 * H]
        o_g = act[:, 6 * H:8 * H]
        c = f_g * c + i_g * g_g
        h = o_g * jnp.tanh(c)
        hs_ref[pl.ds(s, 1), :] = h

    # ---- fused heads: [mu | sigma_pre | value] in one matmul / one store ----
    head = dot(hs_ref[...], wh_ref[...]) + bh_ref[...]       # (B, 2A+1)
    ocol = jax.lax.broadcasted_iota(jnp.int32, (B, 2 * A + 1), 1)
    sig_mask = (ocol >= A) & (ocol < 2 * A)
    out_ref[...] = jnp.where(sig_mask, _softplus(head) + 0.001, head)


# ------------------------------ host wrapper ---------------------------------
def agent_forward_pallas(x, kp):
    B, T, D = x.shape
    A = (kp["w_head"].shape[1] - 1) // 2
    lp1 = (T - 1) // 2
    lp2 = (lp1 - 1) // 2
    assert lp2 >= 1, "state_time too small for two conv+pool stages"
    assert 4 * (lp2 - 1) + 6 <= T - 1, "shift-based schedule needs longer state_time"

    x_flat = x.reshape(B * T, D)
    args = (x_flat,
            kp["w1k0"], kp["w1k1"], kp["b1"],
            kp["w2k0"], kp["w2k1"], kp["b2"],
            kp["w_ih"], kp["b_lstm"], kp["w_hh"],
            kp["w_head"], kp["b_head"])
    vmem = pl.BlockSpec(memory_space=pltpu.MemorySpace.VMEM)
    out = pl.pallas_call(
        functools.partial(_agent_kernel, B=B, T=T, A=A),
        out_shape=jax.ShapeDtypeStruct((B, 2 * A + 1), jnp.float32),
        in_specs=[vmem] * len(args),
        out_specs=vmem,
        scratch_shapes=[pltpu.VMEM((B, 2 * H), jnp.float32)],
    )(*args)
    return out[:, :A], out[:, A:2 * A], out[:, 2 * A:]


# --------------------- parameter setup (PyTorch shapes) ----------------------
def init_torch_params(key, D, A):
    names_shapes = [
        ("a1_w", (D, D, 2)), ("a1_b", (D,)),
        ("a2_w", (D, D, 2)), ("a2_b", (D,)),
        ("a3_wih", (4 * H, D)), ("a3_whh", (4 * H, H)),
        ("a3_bih", (4 * H,)), ("a3_bhh", (4 * H,)),
        ("am_w", (A, H)), ("am_b", (A,)),
        ("as_w", (A, H)), ("as_b", (A,)),
        ("c1_w", (D, D, 2)), ("c1_b", (D,)),
        ("c2_w", (D, D, 2)), ("c2_b", (D,)),
        ("c3_wih", (4 * H, D)), ("c3_whh", (4 * H, H)),
        ("c3_bih", (4 * H,)), ("c3_bhh", (4 * H,)),
        ("cv_w", (1, H)), ("cv_b", (1,)),
    ]
    keys = jax.random.split(key, len(names_shapes))
    return {n: 0.3 * jax.random.normal(k, s, jnp.float32)
            for (n, s), k in zip(names_shapes, keys)}


def _block_diag2(a, b):
    """[[a, 0], [0, b]] for 2-D a, b."""
    top = jnp.concatenate([a, jnp.zeros((a.shape[0], b.shape[1]), a.dtype)], axis=1)
    bot = jnp.concatenate([jnp.zeros((b.shape[0], a.shape[1]), b.dtype), b], axis=1)
    return jnp.concatenate([top, bot], axis=0)


def _fuse_gate_mat(wa_t, wc_t):
    """Interleave per-gate column blocks: [i_a,i_c,f_a,f_c,g_a,g_c,o_a,o_c]."""
    da, dc = wa_t.shape[0], wc_t.shape[0]
    w = jnp.zeros((da + dc, 8 * H), jnp.float32)
    for g in range(4):
        w = w.at[:da, (2 * g) * H:(2 * g + 1) * H].set(wa_t[:, g * H:(g + 1) * H])
        w = w.at[da:, (2 * g + 1) * H:(2 * g + 2) * H].set(wc_t[:, g * H:(g + 1) * H])
    return w


def _fuse_gate_vec(ba, bc):
    parts = []
    for g in range(4):
        parts.append(ba[g * H:(g + 1) * H])
        parts.append(bc[g * H:(g + 1) * H])
    return jnp.concatenate(parts)


def to_kernel_params(p):
    """Fuse actor+critic PyTorch-layout params into the kernel's layouts."""
    A = p["am_b"].shape[0]
    # Conv1 sees the raw input features for both branches -> stack on lanes.
    w1k0 = jnp.concatenate([p["a1_w"][:, :, 0].T, p["c1_w"][:, :, 0].T], axis=1)
    w1k1 = jnp.concatenate([p["a1_w"][:, :, 1].T, p["c1_w"][:, :, 1].T], axis=1)
    b1 = jnp.concatenate([p["a1_b"], p["c1_b"]])[None, :]
    # Conv2 input features are already branch-fused -> block-diagonal weights.
    w2k0 = _block_diag2(p["a2_w"][:, :, 0].T, p["c2_w"][:, :, 0].T)
    w2k1 = _block_diag2(p["a2_w"][:, :, 1].T, p["c2_w"][:, :, 1].T)
    b2 = jnp.concatenate([p["a2_b"], p["c2_b"]])[None, :]
    # LSTM: gate-interleaved fused projections.
    w_ih = _fuse_gate_mat(p["a3_wih"].T, p["c3_wih"].T)
    w_hh = _fuse_gate_mat(p["a3_whh"].T, p["c3_whh"].T)
    b_lstm = _fuse_gate_vec(p["a3_bih"] + p["a3_bhh"],
                            p["c3_bih"] + p["c3_bhh"])[None, :]
    # Heads: one (2H, 2A+1) matrix -> columns [mu | sigma_pre | value].
    w_head = jnp.zeros((2 * H, 2 * A + 1), jnp.float32)
    w_head = w_head.at[0:H, 0:A].set(p["am_w"].T)
    w_head = w_head.at[0:H, A:2 * A].set(p["as_w"].T)
    w_head = w_head.at[H:, 2 * A:].set(p["cv_w"].T)
    b_head = jnp.concatenate([p["am_b"], p["as_b"], p["cv_b"]])[None, :]
    kp = dict(w1k0=w1k0, w1k1=w1k1, b1=b1, w2k0=w2k0, w2k1=w2k1, b2=b2,
              w_ih=w_ih, b_lstm=b_lstm, w_hh=w_hh, w_head=w_head, b_head=b_head)
    return {k: jnp.asarray(v, jnp.float32) for k, v in kp.items()}


# --------------------- pure-JAX reference (PyTorch layout) -------------------
def _ref_lstm_last(seq_in, w_ih, w_hh, b_ih, b_hh):
    S, N, _ = seq_in.shape
    h = jnp.zeros((N, H), jnp.float32)
    c = jnp.zeros((N, H), jnp.float32)
    hs = []
    for s in range(S):
        gates = seq_in[s] @ w_ih.T + h @ w_hh.T + b_ih + b_hh
        i = jax.nn.sigmoid(gates[:, :H])
        f = jax.nn.sigmoid(gates[:, H:2 * H])
        g = jnp.tanh(gates[:, 2 * H:3 * H])
        o = jax.nn.sigmoid(gates[:, 3 * H:])
        c = f * c + i * g
        h = o * jnp.tanh(c)
        hs.append(h)
    out = jnp.stack(hs, axis=0)          # (S, N, H)
    return out[:, -1, :]                 # == out[0][:, -1, :] in PyTorch


def _ref_branch(x, w1, b1, w2, b2, w_ih, w_hh, b_ih, b_hh):
    xt = jnp.transpose(x, (0, 2, 1))     # (B, D, T) like PyTorch's transpose(1,2)
    dn = jax.lax.conv_dimension_numbers(xt.shape, w1.shape, ('NCH', 'OIH', 'NCH'))
    o = jax.lax.conv_general_dilated(xt, w1, (1,), 'VALID',
                                     dimension_numbers=dn) + b1[None, :, None]
    o = jax.lax.reduce_window(o, -jnp.inf, jax.lax.max, (1, 1, 2), (1, 1, 2), 'VALID')
    o = jax.lax.conv_general_dilated(o, w2, (1,), 'VALID',
                                     dimension_numbers=dn) + b2[None, :, None]
    o = jax.lax.reduce_window(o, -jnp.inf, jax.lax.max, (1, 1, 2), (1, 1, 2), 'VALID')
    o = jnp.transpose(o, (0, 2, 1))      # (B, Lp2, D)
    return _ref_lstm_last(o, w_ih, w_hh, b_ih, b_hh)


def agent_forward_ref(x, p):
    h_a = _ref_branch(x, p["a1_w"], p["a1_b"], p["a2_w"], p["a2_b"],
                      p["a3_wih"], p["a3_whh"], p["a3_bih"], p["a3_bhh"])
    mu = h_a @ p["am_w"].T + p["am_b"]
    sigma = jax.nn.softplus(h_a @ p["as_w"].T + p["as_b"]) + 0.001
    h_c = _ref_branch(x, p["c1_w"], p["c1_b"], p["c2_w"], p["c2_b"],
                      p["c3_wih"], p["c3_whh"], p["c3_bih"], p["c3_bhh"])
    value = h_c @ p["cv_w"].T + p["cv_b"]
    return mu, sigma, value


# ----------------------------------- main ------------------------------------
if __name__ == "__main__":
    B, state_time, state_dim, action_dim = 3, 16, 4, 3

    key = jax.random.PRNGKey(0)
    kx, kp_key = jax.random.split(key)
    x = jax.random.normal(kx, (B, state_time, state_dim), jnp.float32)

    torch_params = init_torch_params(kp_key, state_dim, action_dim)
    kernel_params = to_kernel_params(torch_params)

    mu, sigma, value = agent_forward_pallas(x, kernel_params)
    jax.block_until_ready((mu, sigma, value))

    mu_r, sigma_r, value_r = agent_forward_ref(x, torch_params)
    assert mu.shape == (B, action_dim) and sigma.shape == (B, action_dim)
    assert value.shape == (B, 1)
    assert jnp.allclose(mu, mu_r, atol=1e-4, rtol=1e-4)
    assert jnp.allclose(sigma, sigma_r, atol=1e-4, rtol=1e-4)
    assert jnp.allclose(value, value_r, atol=1e-4, rtol=1e-4)

    # TODO(synk): choose_action_* (Normal sampling) and loss_fun are training /
    # sampling utilities outside forward(); not implemented as kernels.
    print("KERNEL_OK")
</pallas_src>

<mosaic_0001>
module attributes {stable_mosaic.version = 11 : i64} {
  func.func @_agent_kernel(%arg0: memref<48x4xf32, #tpu.memory_space<vmem>>, %arg1: memref<4x8xf32, #tpu.memory_space<vmem>>, %arg2: memref<4x8xf32, #tpu.memory_space<vmem>>, %arg3: memref<1x8xf32, #tpu.memory_space<vmem>>, %arg4: memref<8x8xf32, #tpu.memory_space<vmem>>, %arg5: memref<8x8xf32, #tpu.memory_space<vmem>>, %arg6: memref<1x8xf32, #tpu.memory_space<vmem>>, %arg7: memref<8x24xf32, #tpu.memory_space<vmem>>, %arg8: memref<1x24xf32, #tpu.memory_space<vmem>>, %arg9: memref<6x24xf32, #tpu.memory_space<vmem>>, %arg10: memref<6x7xf32, #tpu.memory_space<vmem>>, %arg11: memref<1x7xf32, #tpu.memory_space<vmem>>, %arg12: memref<3x7xf32, #tpu.memory_space<vmem>>, %arg13: memref<3x6xf32, #tpu.memory_space<vmem>>) attributes {dimension_semantics = [], scalar_prefetch = 0 : i64, scratch_operands = 1 : i64, tpu.core_type = #tpu.core_type<tc>} {
    %c0 = arith.constant 0 : index
    %c0_0 = arith.constant 0 : index
    %0 = vector.load %arg0[%c0, %c0_0] : memref<48x4xf32, #tpu.memory_space<vmem>>, vector<48x4xf32>
    %1 = vector.extract_strided_slice %0 {offsets = [1, 0], sizes = [47, 4], strides = [1, 1]} : vector<48x4xf32> to vector<47x4xf32>
    %2 = vector.extract_strided_slice %0 {offsets = [0, 0], sizes = [1, 4], strides = [1, 1]} : vector<48x4xf32> to vector<1x4xf32>
    %3 = tpu.concatenate %1, %2 in 0 : vector<47x4xf32>, vector<1x4xf32> -> vector<48x4xf32>
    %c0_1 = arith.constant 0 : index
    %c0_2 = arith.constant 0 : index
    %4 = vector.load %arg1[%c0_1, %c0_2] : memref<4x8xf32, #tpu.memory_space<vmem>>, vector<4x8xf32>
    %cst = arith.constant dense<0.000000e+00> : vector<48x8xf32>
    %5 = tpu.matmul %0, %4, %cst {dimension_numbers = #tpu.dot_dimension_numbers<[1], [0], [0], [1], [0, 0, 1, 1], [], []>, precision = #tpu.contract_precision<fp32>} : vector<48x4xf32>, vector<4x8xf32>, vector<48x8xf32> -> vector<48x8xf32>
    %c0_3 = arith.constant 0 : index
    %c0_4 = arith.constant 0 : index
    %6 = vector.load %arg2[%c0_3, %c0_4] : memref<4x8xf32, #tpu.memory_space<vmem>>, vector<4x8xf32>
    %cst_5 = arith.constant dense<0.000000e+00> : vector<48x8xf32>
    %7 = tpu.matmul %3, %6, %cst_5 {dimension_numbers = #tpu.dot_dimension_numbers<[1], [0], [0], [1], [0, 0, 1, 1], [], []>, precision = #tpu.contract_precision<fp32>} : vector<48x4xf32>, vector<4x8xf32>, vector<48x8xf32> -> vector<48x8xf32>
    %8 = arith.addf %5, %7 : vector<48x8xf32>
    %c0_6 = arith.constant 0 : index
    %c0_7 = arith.constant 0 : index
    %9 = vector.load %arg3[%c0_6, %c0_7] : memref<1x8xf32, #tpu.memory_space<vmem>>, vector<1x8xf32>
    %10 = vector.broadcast %9 : vector<1x8xf32> to vector<48x8xf32>
    %11 = arith.addf %8, %10 : vector<48x8xf32>
    %12 = vector.extract_strided_slice %11 {offsets = [1, 0], sizes = [47, 8], strides = [1, 1]} : vector<48x8xf32> to vector<47x8xf32>
    %13 = vector.extract_strided_slice %11 {offsets = [0, 0], sizes = [1, 8], strides = [1, 1]} : vector<48x8xf32> to vector<1x8xf32>
    %14 = tpu.concatenate %12, %13 in 0 : vector<47x8xf32>, vector<1x8xf32> -> vector<48x8xf32>
    %15 = arith.maximumf %11, %14 : vector<48x8xf32>
    %c0_8 = arith.constant 0 : index
    %c0_9 = arith.constant 0 : index
    %16 = vector.load %arg4[%c0_8, %c0_9] : memref<8x8xf32, #tpu.memory_space<vmem>>, vector<8x8xf32>
    %cst_10 = arith.constant dense<0.000000e+00> : vector<48x8xf32>
    %17 = tpu.matmul %15, %16, %cst_10 {dimension_numbers = #tpu.dot_dimension_numbers<[1], [0], [0], [1], [0, 0, 1, 1], [], []>, precision = #tpu.contract_precision<fp32>} : vector<48x8xf32>, vector<8x8xf32>, vector<48x8xf32> -> vector<48x8xf32>
    %18 = vector.extract_strided_slice %15 {offsets = [2, 0], sizes = [46, 8], strides = [1, 1]} : vector<48x8xf32> to vector<46x8xf32>
    %19 = vector.extract_strided_slice %15 {offsets = [0, 0], sizes = [2, 8], strides = [1, 1]} : vector<48x8xf32> to vector<2x8xf32>
    %20 = tpu.concatenate %18, %19 in 0 : vector<46x8xf32>, vector<2x8xf32> -> vector<48x8xf32>
    %c0_11 = arith.constant 0 : index
    %c0_12 = arith.constant 0 : index
    %21 = vector.load %arg5[%c0_11, %c0_12] : memref<8x8xf32, #tpu.memory_space<vmem>>, vector<8x8xf32>
    %cst_13 = arith.constant dense<0.000000e+00> : vector<48x8xf32>
    %22 = tpu.matmul %20, %21, %cst_13 {dimension_numbers = #tpu.dot_dimension_numbers<[1], [0], [0], [1], [0, 0, 1, 1], [], []>, precision = #tpu.contract_precision<fp32>} : vector<48x8xf32>, vector<8x8xf32>, vector<48x8xf32> -> vector<48x8xf32>
    %23 = arith.addf %17, %22 : vector<48x8xf32>
    %c0_14 = arith.constant 0 : index
    %c0_15 = arith.constant 0 : index
    %24 = vector.load %arg6[%c0_14, %c0_15] : memref<1x8xf32, #tpu.memory_space<vmem>>, vector<1x8xf32>
    %25 = vector.broadcast %24 : vector<1x8xf32> to vector<48x8xf32>
    %26 = arith.addf %23, %25 : vector<48x8xf32>
    %27 = vector.extract_strided_slice %26 {offsets = [2, 0], sizes = [46, 8], strides = [1, 1]} : vector<48x8xf32> to vector<46x8xf32>
    %28 = vector.extract_strided_slice %26 {offsets = [0, 0], sizes = [2, 8], strides = [1, 1]} : vector<48x8xf32> to vector<2x8xf32>
    %29 = tpu.concatenate %27, %28 in 0 : vector<46x8xf32>, vector<2x8xf32> -> vector<48x8xf32>
    %30 = arith.maximumf %26, %29 : vector<48x8xf32>
    %c0_16 = arith.constant 0 : index
    %c0_17 = arith.constant 0 : index
    %31 = vector.load %arg7[%c0_16, %c0_17] : memref<8x24xf32, #tpu.memory_space<vmem>>, vector<8x24xf32>
    %cst_18 = arith.constant dense<0.000000e+00> : vector<48x24xf32>
    %32 = tpu.matmul %30, %31, %cst_18 {dimension_numbers = #tpu.dot_dimension_numbers<[1], [0], [0], [1], [0, 0, 1, 1], [], []>, precision = #tpu.contract_precision<fp32>} : vector<48x8xf32>, vector<8x24xf32>, vector<48x24xf32> -> vector<48x24xf32>
    %c0_19 = arith.constant 0 : index
    %c0_20 = arith.constant 0 : index
    %33 = vector.load %arg8[%c0_19, %c0_20] : memref<1x24xf32, #tpu.memory_space<vmem>>, vector<1x24xf32>
    %34 = vector.broadcast %33 : vector<1x24xf32> to vector<48x24xf32>
    %35 = arith.addf %32, %34 : vector<48x24xf32>
    %c0_21 = arith.constant 0 : index
    %c0_22 = arith.constant 0 : index
    %36 = vector.load %arg9[%c0_21, %c0_22] : memref<6x24xf32, #tpu.memory_space<vmem>>, vector<6x24xf32>
    %37 = vector.extract_strided_slice %36 {offsets = [0, 0], sizes = [1, 24], strides = [1, 1]} : vector<6x24xf32> to vector<1x24xf32>
    %38 = vector.extract_strided_slice %36 {offsets = [1, 0], sizes = [1, 24], strides = [1, 1]} : vector<6x24xf32> to vector<1x24xf32>
    %39 = vector.extract_strided_slice %36 {offsets = [2, 0], sizes = [1, 24], strides = [1, 1]} : vector<6x24xf32> to vector<1x24xf32>
    %40 = vector.extract_strided_slice %36 {offsets = [3, 0], sizes = [1, 24], strides = [1, 1]} : vector<6x24xf32> to vector<1x24xf32>
    %41 = vector.extract_strided_slice %36 {offsets = [4, 0], sizes = [1, 24], strides = [1, 1]} : vector<6x24xf32> to vector<1x24xf32>
    %42 = vector.extract_strided_slice %36 {offsets = [5, 0], sizes = [1, 24], strides = [1, 1]} : vector<6x24xf32> to vector<1x24xf32>
    %43 = tpu.iota {dimensions = array<i32: 1>} : vector<1x24xi32>
    %c12_i32 = arith.constant 12 : i32
    %44 = vector.broadcast %c12_i32 : i32 to vector<1x24xi32>
    %45 = arith.cmpi sge, %43, %44 : vector<1x24xi32>
    %c18_i32 = arith.constant 18 : i32
    %46 = vector.broadcast %c18_i32 : i32 to vector<1x24xi32>
    %47 = arith.cmpi slt, %43, %46 : vector<1x24xi32>
    %48 = arith.andi %45, %47 : vector<1x24xi1>
    %cst_23 = arith.constant 0.000000e+00 : f32
    %49 = vector.broadcast %cst_23 : f32 to vector<1x6xf32>
    %50 = vector.extract_strided_slice %35 {offsets = [8, 0], sizes = [1, 24], strides = [1, 1]} : vector<48x24xf32> to vector<1x24xf32>
    %51 = math.tanh %50 : vector<1x24xf32>
    %cst_24 = arith.constant 0.000000e+00 : f32
    %52 = vector.broadcast %cst_24 : f32 to vector<1x24xf32>
    %53 = arith.subf %52, %50 : vector<1x24xf32>
    %54 = math.exp %53 : vector<1x24xf32>
    %cst_25 = arith.constant 1.000000e+00 : f32
    %55 = vector.broadcast %cst_25 : f32 to vector<1x24xf32>
    %56 = arith.addf %55, %54 : vector<1x24xf32>
    %cst_26 = arith.constant 1.000000e+00 : f32
    %57 = vector.broadcast %cst_26 : f32 to vector<1x24xf32>
    %58 = arith.divf %57, %56 : vector<1x24xf32>
    %59 = arith.select %48, %51, %58 : vector<1x24xi1>, vector<1x24xf32>
    %60 = vector.extract_strided_slice %59 {offsets = [0, 0], sizes = [1, 6], strides = [1, 1]} : vector<1x24xf32> to vector<1x6xf32>
    %61 = vector.extract_strided_slice %59 {offsets = [0, 6], sizes = [1, 6], strides = [1, 1]} : vector<1x24xf32> to vector<1x6xf32>
    %62 = vector.extract_strided_slice %59 {offsets = [0, 12], sizes = [1, 6], strides = [1, 1]} : vector<1x24xf32> to vector<1x6xf32>
    %63 = vector.extract_strided_slice %59 {offsets = [0, 18], sizes = [1, 6], strides = [1, 1]} : vector<1x24xf32> to vector<1x6xf32>
    %64 = arith.mulf %61, %49 : vector<1x6xf32>
    %65 = arith.mulf %60, %62 : vector<1x6xf32>
    %66 = arith.addf %64, %65 : vector<1x6xf32>
    %67 = math.tanh %66 : vector<1x6xf32>
    %68 = arith.mulf %63, %67 : vector<1x6xf32>
    %c0_27 = arith.constant 0 : index
    %c0_28 = arith.constant 0 : index
    %69 = vector.load %arg13[%c0_27, %c0_28] : memref<3x6xf32, #tpu.memory_space<vmem>>, vector<1x6xf32>
    tpu.vector_store %arg13[%c0_27, %c0_28], %68 {strides = array<i32>} : memref<3x6xf32, #tpu.memory_space<vmem>>, vector<1x6xf32>,
    %70 = vector.extract_strided_slice %35 {offsets = [24, 0], sizes = [1, 24], strides = [1, 1]} : vector<48x24xf32> to vector<1x24xf32>
    %71 = vector.extract_strided_slice %68 {offsets = [0, 0], sizes = [1, 1], strides = [1, 1]} : vector<1x6xf32> to vector<1x1xf32>
    %72 = vector.broadcast %71 : vector<1x1xf32> to vector<1x24xf32>
    %73 = arith.mulf %72, %37 : vector<1x24xf32>
    %74 = arith.addf %70, %73 : vector<1x24xf32>
    %75 = vector.extract_strided_slice %68 {offsets = [0, 1], sizes = [1, 1], strides = [1, 1]} : vector<1x6xf32> to vector<1x1xf32>
    %76 = vector.broadcast %75 : vector<1x1xf32> to vector<1x24xf32>
    %77 = arith.mulf %76, %38 : vector<1x24xf32>
    %78 = arith.addf %74, %77 : vector<1x24xf32>
    %79 = vector.extract_strided_slice %68 {offsets = [0, 2], sizes = [1, 1], strides = [1, 1]} : vector<1x6xf32> to vector<1x1xf32>
    %80 = vector.broadcast %79 : vector<1x1xf32> to vector<1x24xf32>
    %81 = arith.mulf %80, %39 : vector<1x24xf32>
    %82 = arith.addf %78, %81 : vector<1x24xf32>
    %83 = vector.extract_strided_slice %68 {offsets = [0, 3], sizes = [1, 1], strides = [1, 1]} : vector<1x6xf32> to vector<1x1xf32>
    %84 = vector.broadcast %83 : vector<1x1xf32> to vector<1x24xf32>
    %85 = arith.mulf %84, %40 : vector<1x24xf32>
    %86 = arith.addf %82, %85 : vector<1x24xf32>
    %87 = vector.extract_strided_slice %68 {offsets = [0, 4], sizes = [1, 1], strides = [1, 1]} : vector<1x6xf32> to vector<1x1xf32>
    %88 = vector.broadcast %87 : vector<1x1xf32> to vector<1x24xf32>
    %89 = arith.mulf %88, %41 : vector<1x24xf32>
    %90 = arith.addf %86, %89 : vector<1x24xf32>
    %91 = vector.extract_strided_slice %68 {offsets = [0, 5], sizes = [1, 1], strides = [1, 1]} : vector<1x6xf32> to vector<1x1xf32>
    %92 = vector.broadcast %91 : vector<1x1xf32> to vector<1x24xf32>
    %93 = arith.mulf %92, %42 : vector<1x24xf32>
    %94 = arith.addf %90, %93 : vector<1x24xf32>
    %95 = math.tanh %94 : vector<1x24xf32>
    %cst_29 = arith.constant 0.000000e+00 : f32
    %96 = vector.broadcast %cst_29 : f32 to vector<1x24xf32>
    %97 = arith.subf %96, %94 : vector<1x24xf32>
    %98 = math.exp %97 : vector<1x24xf32>
    %cst_30 = arith.constant 1.000000e+00 : f32
    %99 = vector.broadcast %cst_30 : f32 to vector<1x24xf32>
    %100 = arith.addf %99, %98 : vector<1x24xf32>
    %cst_31 = arith.constant 1.000000e+00 : f32
    %101 = vector.broadcast %cst_31 : f32 to vector<1x24xf32>
    %102 = arith.divf %101, %100 : vector<1x24xf32>
    %103 = arith.select %48, %95, %102 : vector<1x24xi1>, vector<1x24xf32>
    %104 = vector.extract_strided_slice %103 {offsets = [0, 0], sizes = [1, 6], strides = [1, 1]} : vector<1x24xf32> to vector<1x6xf32>
    %105 = vector.extract_strided_slice %103 {offsets = [0, 6], sizes = [1, 6], strides = [1, 1]} : vector<1x24xf32> to vector<1x6xf32>
    %106 = vector.extract_strided_slice %103 {offsets = [0, 12], sizes = [1, 6], strides = [1, 1]} : vector<1x24xf32> to vector<1x6xf32>
    %107 = vector.extract_strided_slice %103 {offsets = [0, 18], sizes = [1, 6], strides = [1, 1]} : vector<1x24xf32> to vector<1x6xf32>
    %108 = arith.mulf %105, %66 : vector<1x6xf32>
    %109 = arith.mulf %104, %106 : vector<1x6xf32>
    %110 = arith.addf %108, %109 : vector<1x6xf32>
    %111 = math.tanh %110 : vector<1x6xf32>
    %112 = arith.mulf %107, %111 : vector<1x6xf32>
    %c1 = arith.constant 1 : index
    %c0_32 = arith.constant 0 : index
    %113 = vector.load %arg13[%c1, %c0_32] : memref<3x6xf32, #tpu.memory_space<vmem>>, vector<1x6xf32>
    tpu.vector_store %arg13[%c1, %c0_32], %112 {strides = array<i32>} : memref<3x6xf32, #tpu.memory_space<vmem>>, vector<1x6xf32>,
    %114 = vector.extract_strided_slice %35 {offsets = [40, 0], sizes = [1, 24], strides = [1, 1]} : vector<48x24xf32> to vector<1x24xf32>
    %115 = vector.extract_strided_slice %112 {offsets = [0, 0], sizes = [1, 1], strides = [1, 1]} : vector<1x6xf32> to vector<1x1xf32>
    %116 = vector.broadcast %115 : vector<1x1xf32> to vector<1x24xf32>
    %117 = arith.mulf %116, %37 : vector<1x24xf32>
    %118 = arith.addf %114, %117 : vector<1x24xf32>
    %119 = vector.extract_strided_slice %112 {offsets = [0, 1], sizes = [1, 1], strides = [1, 1]} : vector<1x6xf32> to vector<1x1xf32>
    %120 = vector.broadcast %119 : vector<1x1xf32> to vector<1x24xf32>
    %121 = arith.mulf %120, %38 : vector<1x24xf32>
    %122 = arith.addf %118, %121 : vector<1x24xf32>
    %123 = vector.extract_strided_slice %112 {offsets = [0, 2], sizes = [1, 1], strides = [1, 1]} : vector<1x6xf32> to vector<1x1xf32>
    %124 = vector.broadcast %123 : vector<1x1xf32> to vector<1x24xf32>
    %125 = arith.mulf %124, %39 : vector<1x24xf32>
    %126 = arith.addf %122, %125 : vector<1x24xf32>
    %127 = vector.extract_strided_slice %112 {offsets = [0, 3], sizes = [1, 1], strides = [1, 1]} : vector<1x6xf32> to vector<1x1xf32>
    %128 = vector.broadcast %127 : vector<1x1xf32> to vector<1x24xf32>
    %129 = arith.mulf %128, %40 : vector<1x24xf32>
    %130 = arith.addf %126, %129 : vector<1x24xf32>
    %131 = vector.extract_strided_slice %112 {offsets = [0, 4], sizes = [1, 1], strides = [1, 1]} : vector<1x6xf32> to vector<1x1xf32>
    %132 = vector.broadcast %131 : vector<1x1xf32> to vector<1x24xf32>
    %133 = arith.mulf %132, %41 : vector<1x24xf32>
    %134 = arith.addf %130, %133 : vector<1x24xf32>
    %135 = vector.extract_strided_slice %112 {offsets = [0, 5], sizes = [1, 1], strides = [1, 1]} : vector<1x6xf32> to vector<1x1xf32>
    %136 = vector.broadcast %135 : vector<1x1xf32> to vector<1x24xf32>
    %137 = arith.mulf %136, %42 : vector<1x24xf32>
    %138 = arith.addf %134, %137 : vector<1x24xf32>
    %139 = math.tanh %138 : vector<1x24xf32>
    %cst_33 = arith.constant 0.000000e+00 : f32
    %140 = vector.broadcast %cst_33 : f32 to vector<1x24xf32>
    %141 = arith.subf %140, %138 : vector<1x24xf32>
    %142 = math.exp %141 : vector<1x24xf32>
    %cst_34 = arith.constant 1.000000e+00 : f32
    %143 = vector.broadcast %cst_34 : f32 to vector<1x24xf32>
    %144 = arith.addf %143, %142 : vector<1x24xf32>
    %cst_35 = arith.constant 1.000000e+00 : f32
    %145 = vector.broadcast %cst_35 : f32 to vector<1x24xf32>
    %146 = arith.divf %145, %144 : vector<1x24xf32>
    %147 = arith.select %48, %139, %146 : vector<1x24xi1>, vector<1x24xf32>
    %148 = vector.extract_strided_slice %147 {offsets = [0, 0], sizes = [1, 6], strides = [1, 1]} : vector<1x24xf32> to vector<1x6xf32>
    %149 = vector.extract_strided_slice %147 {offsets = [0, 6], sizes = [1, 6], strides = [1, 1]} : vector<1x24xf32> to vector<1x6xf32>
    %150 = vector.extract_strided_slice %147 {offsets = [0, 12], sizes = [1, 6], strides = [1, 1]} : vector<1x24xf32> to vector<1x6xf32>
    %151 = vector.extract_strided_slice %147 {offsets = [0, 18], sizes = [1, 6], strides = [1, 1]} : vector<1x24xf32> to vector<1x6xf32>
    %152 = arith.mulf %149, %110 : vector<1x6xf32>
    %153 = arith.mulf %148, %150 : vector<1x6xf32>
    %154 = arith.addf %152, %153 : vector<1x6xf32>
    %155 = math.tanh %154 : vector<1x6xf32>
    %156 = arith.mulf %151, %155 : vector<1x6xf32>
    %c2 = arith.constant 2 : index
    %c0_36 = arith.constant 0 : index
    %157 = vector.load %arg13[%c2, %c0_36] : memref<3x6xf32, #tpu.memory_space<vmem>>, vector<1x6xf32>
    tpu.vector_store %arg13[%c2, %c0_36], %156 {strides = array<i32>} : memref<3x6xf32, #tpu.memory_space<vmem>>, vector<1x6xf32>,
    %c0_37 = arith.constant 0 : index
    %c0_38 = arith.constant 0 : index
    %158 = vector.load %arg13[%c0_37, %c0_38] : memref<3x6xf32, #tpu.memory_space<vmem>>, vector<3x6xf32>
    %c0_39 = arith.constant 0 : index
    %c0_40 = arith.constant 0 : index
    %159 = vector.load %arg10[%c0_39, %c0_40] : memref<6x7xf32, #tpu.memory_space<vmem>>, vector<6x7xf32>
    %cst_41 = arith.constant dense<0.000000e+00> : vector<3x7xf32>
    %160 = tpu.matmul %158, %159, %cst_41 {dimension_numbers = #tpu.dot_dimension_numbers<[1], [0], [0], [1], [0, 0, 1, 1], [], []>, precision = #tpu.contract_precision<fp32>} : vector<3x6xf32>, vector<6x7xf32>, vector<3x7xf32> -> vector<3x7xf32>
    %c0_42 = arith.constant 0 : index
    %c0_43 = arith.constant 0 : index
    %161 = vector.load %arg11[%c0_42, %c0_43] : memref<1x7xf32, #tpu.memory_space<vmem>>, vector<1x7xf32>
    %162 = vector.broadcast %161 : vector<1x7xf32> to vector<3x7xf32>
    %163 = arith.addf %160, %162 : vector<3x7xf32>
    %164 = tpu.iota {dimensions = array<i32: 1>} : vector<3x7xi32>
    %c3_i32 = arith.constant 3 : i32
    %165 = vector.broadcast %c3_i32 : i32 to vector<3x7xi32>
    %166 = arith.cmpi sge, %164, %165 : vector<3x7xi32>
    %c6_i32 = arith.constant 6 : i32
    %167 = vector.broadcast %c6_i32 : i32 to vector<3x7xi32>
    %168 = arith.cmpi slt, %164, %167 : vector<3x7xi32>
    %169 = arith.andi %166, %168 : vector<3x7xi1>
    %cst_44 = arith.constant 0.000000e+00 : f32
    %170 = vector.broadcast %cst_44 : f32 to vector<3x7xf32>
    %171 = arith.maximumf %163, %170 : vector<3x7xf32>
    %172 = math.absf %163 : vector<3x7xf32>
    %cst_45 = arith.constant 0.000000e+00 : f32
    %173 = vector.broadcast %cst_45 : f32 to vector<3x7xf32>
    %174 = arith.subf %173, %172 : vector<3x7xf32>
    %175 = math.exp %174 : vector<3x7xf32>
    %cst_46 = arith.constant 1.000000e+00 : f32
    %176 = vector.broadcast %cst_46 : f32 to vector<3x7xf32>
    %177 = arith.addf %176, %175 : vector<3x7xf32>
    %178 = math.log %177 : vector<3x7xf32>
    %179 = arith.addf %171, %178 : vector<3x7xf32>
    %cst_47 = arith.constant 1.000000e-03 : f32
    %180 = vector.broadcast %cst_47 : f32 to vector<3x7xf32>
    %181 = arith.addf %179, %180 : vector<3x7xf32>
    %182 = arith.select %169, %181, %163 : vector<3x7xi1>, vector<3x7xf32>
    %c0_48 = arith.constant 0 : index
    %c0_49 = arith.constant 0 : index
    %183 = vector.load %arg12[%c0_48, %c0_49] : memref<3x7xf32, #tpu.memory_space<vmem>>, vector<3x7xf32>
    tpu.vector_store %arg12[%c0_48, %c0_49], %182 {strides = array<i32>} : memref<3x7xf32, #tpu.memory_space<vmem>>, vector<3x7xf32>,
    return
  }
}

</mosaic_0001>

<bundles_post_ra>
// kernel: tpu_custom_call.1
= control target key start
LH: loop header
LB: loop body
LE: loop exit
PB: predicated region body
PF: predicated region fallthrough
CT: control target
= control target key end

     0   :  { %vm85_vm0 = vcmask 1043456   ;;  %vm54_vm1 = vcmask 1046528   ;;  %vm71_vm2 = vcmask 31744   ;;  %s2884_s0 = inlined_call_operand.vmem [shape: f32[48,4], index: 0, kind: input, shape index: {}]   ;;  %s2885_s1 = inlined_call_operand.vmem [shape: f32[4,8], index: 1, kind: input, shape index: {}]   ;;  %s2886_s2 = inlined_call_operand.vmem [shape: f32[4,8], index: 2, kind: input, shape index: {}]   ;;  %s2887_s3 = inlined_call_operand.vmem [shape: f32[1,8], index: 3, kind: input, shape index: {}]   ;;  %s2888_s4 = inlined_call_operand.vmem [shape: f32[8,8], index: 4, kind: input, shape index: {}]   ;;  %s2889_s5 = inlined_call_operand.vmem [shape: f32[8,8], index: 5, kind: input, shape index: {}]   ;;  %s2890_s6 = inlined_call_operand.vmem [shape: f32[1,8], index: 6, kind: input, shape index: {}]   ;;  %s2891_s7 = inlined_call_operand.vmem [shape: f32[8,24], index: 7, kind: input, shape index: {}]   ;;  %s2892_s8 = inlined_call_operand.vmem [shape: f32[1,24], index: 8, kind: input, shape index: {}]   ;;  %s2893_s9 = inlined_call_operand.vmem [shape: f32[6,24], index: 9, kind: input, shape index: {}]   ;;  %s2894_s10 = inlined_call_operand.vmem [shape: f32[6,7], index: 10, kind: input, shape index: {}]   ;;  %s2895_s11 = inlined_call_operand.vmem [shape: f32[1,7], index: 11, kind: input, shape index: {}]   ;;  %s2896_s12 = inlined_call_operand.hbm [shape: f32[3,7], index: 12, kind: output, shape index: {}]  }
   0x1   :  { %v70_v0 = vld [vmem:[%s2886_s2] sm:$0xf]  ;;  %v2326_v2 = vld [vmem:[%s2884_s0 + $0x8] sm:$0xff]  ;;  %v2339_v7 = vld [vmem:[%s2884_s0 + $0x10] sm:$0xff] }
   0x2   :  { %v2321_v1 = vld [vmem:[%s2884_s0] sm:$0xff]  ;;  %v87_v3 = vsel %vm85_vm0, %v70_v0, 0  ;;  %v56_v5 = vrot.slane %v2326_v2, 1  ;;  %v2334_v6 = vld [vmem:[%s2884_s0 + $0x28] sm:$0xff]  ;;  %v58_v10 = vrot.slane %v2339_v7, 1  ;;  %v2349_v12 = vld [vmem:[%s2884_s0 + $0x18] sm:$0xff] }
   0x3   :  { %v55_v4 = vrot.slane %v2321_v1, 1  ;;  %v104_v8 = vand.u32 4294901760, %v87_v3  ;;  %v64_v9 = vrot.slane %v2334_v6, 1  ;;  %v69_v11 = vld [vmem:[%s2885_s1] sm:$0xf]  ;;  %v60_v15 = vrot.slane %v2349_v12, 1 }
   0x4   :  { %v403_v14 = vsel %vm85_vm0, %v69_v11, 0  ;;  %v59_v19 = vsel %vm54_vm1, %v56_v5, %v58_v10  ;;  %v2371_v28 = vld [vmem:[%s2884_s0 + $0x20] sm:$0xff] }
   0x5   :  { %v57_v13 = vsel %vm54_vm1, %v55_v4, %v56_v5  ;;  %105 = vmatpush.msra.mxu0 %v104_v8  ;;  %2155 = vmatpush.msra.mxu2 %v104_v8  ;;  %v171_v16 = vsub.f32 %v87_v3, %v104_v8  ;;  %v68_v18 = vsel %vm54_vm1, %v64_v9, %v55_v4  ;;  %v74_v22 = vsel %vm71_vm2, %v59_v19, 0 }
   0x6   :  { %v72_v17 = vsel %vm71_vm2, %v57_v13, 0  ;;  %v83_v21 = vsel %vm71_vm2, %v68_v18, 0  ;;  %v420_v23 = vand.u32 4294901760, %v403_v14  ;;  %v2365_v26 = vand.u32 4294901760, %v74_v22 }
   0x7   :  { %v2359_v20 = vand.u32 4294901760, %v72_v17  ;;  %v172_v24 = vand.u32 4294901760, %v171_v16  ;;  %v2363_v25 = vand.u32 4294901760, %v83_v21  ;;  %218 = vmatpush.msrb.mxu2 %v171_v16  ;;  %v61_v27 = vsel %vm54_vm1, %v58_v10, %v60_v15 }
   0x8   :  { %17 = vsyncpa [#allocation4], 0  ;;  %v487_v30 = vsub.f32 %v403_v14, %v420_v23  ;;  %v115_v33 = vsub.f32 %v74_v22, %v2365_v26  ;;  %v76_v34 = vsel %vm71_vm2, %v61_v27, 0  ;;  %v62_v37 = vrot.slane %v2371_v28, 1  ;;  %s2240_s23 = smov 6   ;;  %s2241_s24 = smov 12  }
   0x9   :  { %v107_v29 = vsub.f32 %v72_v17, %v2359_v20  ;;  %v173_v31 = vsub.f32 %v171_v16, %v172_v24  ;;  %v2375_v32 = vsub.f32 %v83_v21, %v2363_v25  ;;  %322 = vmatpush.msrb.mxu0 %v172_v24  ;;  %v2381_v43 = vand.u32 4294901760, %v76_v34  ;;  %s2146_s14 = sshll.u32 %s2896_s12, 4  ;;  %s2147_s14 = int_to_ptr.hbm [resolvable:$true] %s2146_s14 }
   0xa   :  { %v488_v36 = vand.u32 4294901760, %v487_v30  ;;  %v116_v41 = vand.u32 4294901760, %v115_v33  ;;  %v63_v47 = vsel %vm54_vm1, %v60_v15, %v62_v37  ;;  %v65_v55 = vsel %vm54_vm1, %v62_v37, %v64_v9 }
   0xb   :  { %v108_v35 = vand.u32 4294901760, %v107_v29  ;;  %v174_v38 = vand.u32 4294901760, %v173_v31  ;;  %v148_v39 = vand.u32 4294901760, %v2375_v32  ;;  %v123_v50 = vsub.f32 %v76_v34, %v2381_v43 }
   0xc   :  { %v489_v42 = vsub.f32 %v487_v30, %v488_v36  ;;  %v117_v49 = vsub.f32 %v115_v33, %v116_v41  ;;  %v78_v51 = vsel %vm71_vm2, %v63_v47, 0  ;;  %v80_v58 = vsel %vm71_vm2, %v65_v55, 0 }
   0xd   :  { %v109_v40 = vsub.f32 %v107_v29, %v108_v35  ;;  %2156 = vmatpush.msra.mxu3 %v174_v38  ;;  %v149_v44 = vsub.f32 %v2375_v32, %v148_v39  ;;  %175 = vmatpush.msra.mxu1 %v174_v38  ;;  %v124_v53 = vand.u32 4294901760, %v123_v50  ;;  %v2391_v54 = vand.u32 4294901760, %v78_v51 }
   0xe   :  { %197 = vmatmul.f32.vlgmr.msra.gmra.mxu3 %v2363_v25  ;;  %177 = vmatmul.f32.vlgmr.msra.gmra.mxu1 %v2359_v20  ;;  %v490_v46 = vand.u32 4294901760, %v489_v42  ;;  %v118_v52 = vand.u32 4294901760, %v117_v49  ;;  %v138_v61 = vand.u32 4294901760, %v80_v58  ;;  %v392_v11 = vsel %vm71_vm2, %v2326_v2, 0 }
   0xf   :  { %v110_v45 = vand.u32 4294901760, %v109_v40  ;;  %v150_v48 = vand.u32 4294901760, %v149_v44  ;;  %266 = vmatpush.msrb.mxu3 %v104_v8  ;;  %364 = vmatpush.msrb.mxu1 %v104_v8  ;;  %v125_v56 = vsub.f32 %v123_v50, %v124_v53  ;;  %v131_v57 = vsub.f32 %v78_v51, %v2391_v54 }
  0x10   :  { %v139_v63 = vsub.f32 %v80_v58, %v138_v61  ;;  %v390_v8 = vsel %vm71_vm2, %v2321_v1, 0  ;;  %v2410_v14 = vand.u32 4294901760, %v392_v11  ;;  %v394_v16 = vsel %vm71_vm2, %v2339_v7, 0 }
  0x11   :  { %111 = vmatmul.f32.vlgmr.msra.gmra.mxu0 %v110_v45  ;;  %491 = vmatpush.msra.mxu3 %v490_v46  ;;  %v126_v59 = vand.u32 4294901760, %v125_v56  ;;  %v132_v60 = vand.u32 4294901760, %v131_v57  ;;  %v2403_v9 = vand.u32 4294901760, %v390_v8  ;;  %v438_v18 = vand.u32 4294901760, %v394_v16 }
  0x12   :  { %151 = vmatmul.f32.vlgmr.msra.gmra.mxu2 %v150_v48  ;;  %534 = vmatpush.msra.mxu0 %v487_v30  ;;  %v140_v3 = vand.u32 4294901760, %v139_v63  ;;  %v431_v15 = vsub.f32 %v392_v11, %v2410_v14  ;;  %v396_v21 = vsel %vm71_vm2, %v2349_v12, 0  ;;  %v398_v27 = vsel %vm71_vm2, %v2371_v28, 0 }
  0x13   :  { %421 = vmatpush.msra.mxu2 %v420_v23  ;;  %582 = vmatpush.msra.mxu1 %v420_v23  ;;  %v133_v62 = vsub.f32 %v131_v57, %v132_v60  ;;  %v423_v10 = vsub.f32 %v390_v8, %v2403_v9  ;;  %v446_v24 = vand.u32 4294901760, %v396_v21  ;;  %v454_v31 = vand.u32 4294901760, %v398_v27 }
  0x14   :  { %v141_v4 = vsub.f32 %v139_v63, %v140_v3  ;;  %v432_v2 = vand.u32 4294901760, %v431_v15  ;;  %vm754_vm3 = vcmask 1045504   ;;  %vm770_vm4 = vcmask 64512  }
  0x15   :  { %v134_v0 = vand.u32 4294901760, %v133_v62  ;;  %v424_v13 = vand.u32 4294901760, %v423_v10 }
  0x16   :  { %181 = vmatmul.f32.gmra.mxu1 %v2365_v26  ;;  %270 = vmatmul.f32.vlgmr.msrb.gmra.mxu3 %v108_v35  ;;  %v142_v5 = vand.u32 4294901760, %v141_v4  ;;  %v433_v19 = vsub.f32 %v431_v15, %v432_v2 }
  0x17   :  { %680 = vmatpush.msrb.mxu3 %v420_v23  ;;  %v425_v1 = vsub.f32 %v423_v10, %v424_v13 }
  0x18   :  { %v434_v22 = vand.u32 4294901760, %v433_v19 }
  0x19   :  { %119 = vmatmul.f32.gmra.mxu0 %v118_v52  ;;  %v426_v17 = vand.u32 4294901760, %v425_v1 }
  0x1a   :  { %221 = vmatmul.f32.vlgmr.msrb.gmra.mxu2 %v107_v29 }
  0x1b   :  { %638 = vmatpush.msrb.mxu2 %v488_v36 }
  0x1e   :  { %185 = vmatmul.f32.gmra.mxu1 %v2381_v43  ;;  %276 = vmatmul.f32.gmra.mxu3 %v116_v41 }
  0x21   :  { %127 = vmatmul.f32.gmra.mxu0 %v126_v59 }
  0x22   :  { %226 = vmatmul.f32.gmra.mxu2 %v115_v33  ;;  %v400_v33 = vsel %vm71_vm2, %v2334_v6, 0 }
  0x23   :  { %v462_v36 = vand.u32 4294901760, %v400_v33 }
  0x25   :  { %v463_v37 = vsub.f32 %v400_v33, %v462_v36 }
  0x26   :  { %189 = vmatmul.f32.gmra.mxu1 %v2391_v54  ;;  %282 = vmatmul.f32.gmra.mxu3 %v124_v53 }
  0x29   :  { %135 = vmatmul.f32.gmra.mxu0 %v134_v0 }
  0x2a   :  { %231 = vmatmul.f32.gmra.mxu2 %v123_v50 }
  0x2e   :  { %193 = vmatmul.f32.gmra.mxu1 %v138_v61  ;;  %288 = vmatmul.f32.gmra.mxu3 %v132_v60 }
  0x31   :  { %143 = vmatmul.f32.gmra.mxu0 %v142_v5 }
  0x32   :  { %236 = vmatmul.f32.gmra.mxu2 %v131_v57 }
  0x36   :  { %294 = vmatmul.f32.gmra.mxu3 %v140_v3  ;;  %366 = vmatmul.f32.vlgmr.msrb.gmra.mxu1 %v2359_v20 }
  0x39   :  { %324 = vmatmul.f32.vlgmr.msrb.gmra.mxu0 %v2359_v20  ;;  %v439_v20 = vsub.f32 %v394_v16, %v438_v18  ;;  %v769_v16 = vld [vmem:[%s2889_s5] sm:$0xff] }
  0x3a   :  { %241 = vmatmul.f32.gmra.mxu2 %v139_v63 }
  0x3b   :  { %v440_v23 = vand.u32 4294901760, %v439_v20 }
  0x3d   :  { %v441_v7 = vsub.f32 %v439_v20, %v440_v23 }
  0x3e   :  { %300 = vmatmul.f32.gmra.mxu3 %v148_v39  ;;  %370 = vmatmul.f32.gmra.mxu1 %v2365_v26  ;;  %v464_v39 = vand.u32 4294901760, %v463_v37 }
  0x3f   :  { %v442_v29 = vand.u32 4294901760, %v441_v7 }
  0x40   :  { %v465_v40 = vsub.f32 %v463_v37, %v464_v39 }
  0x41   :  { %328 = vmatmul.f32.gmra.mxu0 %v2365_v26  ;;  %v447_v26 = vsub.f32 %v396_v21, %v446_v24 }
  0x42   :  { %246 = vmatmul.f32.gmra.mxu2 %v2375_v32  ;;  %v455_v32 = vsub.f32 %v398_v27, %v454_v31  ;;  %v466_v41 = vand.u32 4294901760, %v465_v40 }
  0x43   :  { %v448_v30 = vand.u32 4294901760, %v447_v26 }
  0x44   :  { %v456_v35 = vand.u32 4294901760, %v455_v32 }
  0x45   :  { %v449_v12 = vsub.f32 %v447_v26, %v448_v30 }
  0x46   :  { %374 = vmatmul.f32.gmra.mxu1 %v2381_v43  ;;  %493 = vmatmul.f32.vlgmr.msra.gmra.mxu3 %v2403_v9  ;;  %v457_v28 = vsub.f32 %v455_v32, %v456_v35 }
  0x47   :  { %v450_v34 = vand.u32 4294901760, %v449_v12 }
  0x48   :  { %v458_v38 = vand.u32 4294901760, %v457_v28 }
  0x49   :  { %332 = vmatmul.f32.gmra.mxu0 %v2381_v43 }
  0x4a   :  { %427 = vmatmul.f32.vlgmr.msra.gmra.mxu2 %v426_v17 }
  0x4e   :  { %378 = vmatmul.f32.gmra.mxu1 %v2391_v54  ;;  %497 = vmatmul.f32.gmra.mxu3 %v2410_v14 }
  0x51   :  { %336 = vmatmul.f32.gmra.mxu0 %v2391_v54 }
  0x52   :  { %435 = vmatmul.f32.gmra.mxu2 %v434_v22 }
  0x56   :  { %382 = vmatmul.f32.gmra.mxu1 %v138_v61  ;;  %501 = vmatmul.f32.gmra.mxu3 %v438_v18 }
  0x59   :  { %340 = vmatmul.f32.gmra.mxu0 %v138_v61 }
  0x5a   :  { %443 = vmatmul.f32.gmra.mxu2 %v442_v29 }
  0x5e   :  { %386 = vmatmul.f32.gmra.mxu1 %v2363_v25  ;;  %505 = vmatmul.f32.gmra.mxu3 %v446_v24 }
  0x61   :  { %344 = vmatmul.f32.gmra.mxu0 %v2363_v25 }
  0x62   :  { %451 = vmatmul.f32.gmra.mxu2 %v450_v34 }
  0x66   :  { %509 = vmatmul.f32.gmra.mxu3 %v454_v31  ;;  %586 = vmatmul.f32.vlgmr.msra.gmra.mxu1 %v424_v13 }
  0x69   :  { %537 = vmatmul.f32.vlgmr.msra.gmra.mxu0 %v423_v10 }
  0x6a   :  { %459 = vmatmul.f32.gmra.mxu2 %v458_v38 }
  0x6e   :  { %513 = vmatmul.f32.gmra.mxu3 %v462_v36  ;;  %592 = vmatmul.f32.gmra.mxu1 %v432_v2  ;;  %v799_v2 = vand.u32 4294901760, %v769_v16 }
  0x70   :  { %800 = vmatpush.msrb.mxu0 %v799_v2  ;;  %961 = vmatpush.msra.mxu3 %v799_v2 }
  0x71   :  { %542 = vmatmul.f32.gmra.mxu0 %v431_v15 }
  0x72   :  { %467 = vmatmul.f32.gmra.mxu2 %v466_v41 }
  0x76   :  { %598 = vmatmul.f32.gmra.mxu1 %v440_v23  ;;  %682 = vmatmul.f32.vlgmr.msrb.gmra.mxu3 %v2403_v9 }
  0x79   :  { %547 = vmatmul.f32.gmra.mxu0 %v439_v20 }
  0x7a   :  { %640 = vmatmul.f32.vlgmr.msrb.gmra.mxu2 %v2403_v9 }
  0x7e   :  { %604 = vmatmul.f32.gmra.mxu1 %v448_v30  ;;  %686 = vmatmul.f32.gmra.mxu3 %v2410_v14 }
  0x81   :  { %552 = vmatmul.f32.gmra.mxu0 %v447_v26 }
  0x82   :  { %644 = vmatmul.f32.gmra.mxu2 %v2410_v14 }
  0x86   :  { %610 = vmatmul.f32.gmra.mxu1 %v456_v35  ;;  %690 = vmatmul.f32.gmra.mxu3 %v438_v18 }
  0x89   :  { %557 = vmatmul.f32.gmra.mxu0 %v455_v32 }
  0x8a   :  { %648 = vmatmul.f32.gmra.mxu2 %v438_v18  ;;  %v866_v18 = vsub.f32 %v769_v16, %v799_v2 }
  0x8b   :  { %v2438_v6 = vpop.f32.mrf.mxu1 }
  0x8c   :  { %913 = vmatpush.msra.mxu2 %v866_v18  ;;  %v867_v21 = vand.u32 4294901760, %v866_v18 }
  0x8e   :  { %v2440_v25 = vpop.f32.mrf.mxu0  ;;  %616 = vmatmul.f32.gmra.mxu1 %v464_v39  ;;  %694 = vmatmul.f32.gmra.mxu3 %v446_v24  ;;  %v868_v23 = vsub.f32 %v866_v18, %v867_v21 }
  0x8f   :  { %1017 = vmatpush.msra.mxu0 %v867_v21  ;;  %v179_v30 = vadd.f32 %v2438_v6, %v2440_v25 }
  0x91   :  { %562 = vmatmul.f32.gmra.mxu0 %v463_v37  ;;  %v2442_v42 = vpop.f32.mrf.mxu3 }
  0x92   :  { %652 = vmatmul.f32.gmra.mxu2 %v446_v24  ;;  %v869_v24 = vand.u32 4294901760, %v868_v23 }
  0x93   :  { %v182_v43 = vpop.f32.mrf.mxu1 }
  0x94   :  { %870 = vmatpush.msrb.mxu1 %v869_v24 }
  0x95   :  { %v2444_v44 = vpop.f32.mrf.mxu2 }
  0x96   :  { %v120_v45 = vpop.f32.mrf.mxu0  ;;  %698 = vmatmul.f32.gmra.mxu3 %v454_v31  ;;  %1059 = vmatpush.msra.mxu1 %v799_v2 }
  0x99   :  { %v271_v46 = vpop.f32.mrf.mxu3 }
  0x9a   :  { %656 = vmatmul.f32.gmra.mxu2 %v454_v31  ;;  %v183_v31 = vadd.f32 %v182_v43, %v120_v45 }
  0x9b   :  { %v186_v47 = vpop.f32.mrf.mxu1 }
  0x9d   :  { %v222_v48 = vpop.f32.mrf.mxu2 }
  0x9e   :  { %v128_v49 = vpop.f32.mrf.mxu0  ;;  %702 = vmatmul.f32.gmra.mxu3 %v462_v36  ;;  %v223_v33 = vadd.f32 %v222_v48, %v179_v30 }
  0x9f   :  { %v187_v37 = vadd.f32 %v186_v47, %v128_v49 }
  0xa0   :  { %v272_v28 = vadd.f32 %v271_v46, %v223_v33 }
  0xa1   :  { %v277_v50 = vpop.f32.mrf.mxu3 }
  0xa2   :  { %660 = vmatmul.f32.gmra.mxu2 %v462_v36 }
  0xa3   :  { %v2446_v51 = vpop.f32.mrf.mxu1 }
  0xa5   :  { %v227_v52 = vpop.f32.mrf.mxu2 }
  0xa6   :  { %v2448_v53 = vpop.f32.mrf.mxu0  ;;  %v228_v35 = vadd.f32 %v227_v52, %v183_v31 }
  0xa7   :  { %v191_v48 = vadd.f32 %v2446_v51, %v2448_v53 }
  0xa8   :  { %v278_v38 = vadd.f32 %v277_v50, %v228_v35 }
  0xa9   :  { %v2450_v54 = vpop.f32.mrf.mxu3 }
  0xab   :  { %v2452_v55 = vpop.f32.mrf.mxu1 }
  0xad   :  { %v232_v56 = vpop.f32.mrf.mxu2 }
  0xae   :  { %v2454_v57 = vpop.f32.mrf.mxu0  ;;  %v233_v6 = vadd.f32 %v232_v56, %v187_v37 }
  0xb0   :  { %v284_v52 = vadd.f32 %v2450_v54, %v233_v6 }
  0xb1   :  { %v2456_v58 = vpop.f32.mrf.mxu3 }
  0xb3   :  { %v367_v59 = vpop.f32.mrf.mxu1 }
  0xb5   :  { %v2458_v60 = vpop.f32.mrf.mxu2 }
  0xb6   :  { %v325_v61 = vpop.f32.mrf.mxu0 }
  0xb7   :  { %v326_v39 = vadd.f32 %v325_v61, %v272_v28  ;;  %v199_v28 = vadd.f32 %v2442_v42, %v2444_v44 }
  0xb9   :  { %v2460_v62 = vpop.f32.mrf.mxu3  ;;  %v368_v25 = vadd.f32 %v367_v59, %v326_v39 }
  0xbb   :  { %v371_v0 = vpop.f32.mrf.mxu1 }
  0xbd   :  { %v2462_v63 = vpop.f32.mrf.mxu2 }
  0xbe   :  { %v329_v3 = vpop.f32.mrf.mxu0 }
  0xbf   :  { %v330_v41 = vadd.f32 %v329_v3, %v278_v38  ;;  %v238_v3 = vadd.f32 %v2458_v60, %v191_v48 }
  0xc1   :  { %v2464_v4 = vpop.f32.mrf.mxu3  ;;  %v372_v43 = vadd.f32 %v371_v0, %v330_v41  ;;  %v195_v0 = vadd.f32 %v2452_v55, %v2454_v57  ;;  %v2508_v55 = vld [vmem:[%s2887_s3] ss:$0 sm:$0xff] }
  0xc3   :  { %v375_v9 = vpop.f32.mrf.mxu1  ;;  %v243_v60 = vadd.f32 %v2462_v63, %v195_v0  ;;  %v747_v63 = vld [vmem:[%s2888_s4] sm:$0xff] }
  0xc5   :  { %v2466_v5 = vpop.f32.mrf.mxu2 }
  0xc6   :  { %v333_v8 = vpop.f32.mrf.mxu0 }
  0xc7   :  { %v334_v49 = vadd.f32 %v333_v8, %v284_v52 }
  0xc9   :  { %v494_v10 = vpop.f32.mrf.mxu3  ;;  %v376_v56 = vadd.f32 %v375_v9, %v334_v49 }
  0xcb   :  { %v2470_v14 = vpop.f32.mrf.mxu1 }
  0xcd   :  { %v428_v11 = vpop.f32.mrf.mxu2 }
  0xce   :  { %v2468_v13 = vpop.f32.mrf.mxu0  ;;  %v429_v45 = vadd.f32 %v428_v11, %v368_v25  ;;  %v290_v11 = vadd.f32 %v2456_v58, %v238_v3  ;;  %v296_v58 = vadd.f32 %v2460_v62, %v243_v60  ;;  %v248_v62 = vadd.f32 %v2466_v5, %v199_v28 }
  0xd0   :  { %v495_v50 = vadd.f32 %v494_v10, %v429_v45  ;;  %v338_v8 = vadd.f32 %v2468_v13, %v290_v11 }
  0xd1   :  { %v498_v1 = vpop.f32.mrf.mxu3 }
  0xd2   :  { %v380_v9 = vadd.f32 %v2470_v14, %v338_v8  ;;  %v2515_v14 = vand.u32 4294901760, %v747_v63 }
  0xd3   :  { %v2477_v20 = vpop.f32.mrf.mxu1 }
  0xd4   :  { %1113 = vmatpush.msrb.mxu2 %v2515_v14 }
  0xd5   :  { %v436_v15 = vpop.f32.mrf.mxu2 }
  0xd6   :  { %v2475_v17 = vpop.f32.mrf.mxu0  ;;  %v437_v46 = vadd.f32 %v436_v15, %v372_v43 }
  0xd7   :  { %v342_v37 = vadd.f32 %v2475_v17, %v296_v58  ;;  %v2529_v17 = vsub.f32 %v747_v63, %v2515_v14 }
  0xd8   :  { %v499_v21 = vadd.f32 %v498_v1, %v437_v46 }
  0xd9   :  { %v502_v19 = vpop.f32.mrf.mxu3  ;;  %v384_v43 = vadd.f32 %v2477_v20, %v342_v37 }
  0xdb   :  { %v2483_v27 = vpop.f32.mrf.mxu1 }
  0xdd   :  { %v444_v22 = vpop.f32.mrf.mxu2 }
  0xde   :  { %v2479_v7 = vpop.f32.mrf.mxu0  ;;  %v445_v51 = vadd.f32 %v444_v22, %v376_v56 }
  0xe0   :  { %v503_v31 = vadd.f32 %v502_v19, %v445_v51 }
  0xe1   :  { %v2481_v26 = vpop.f32.mrf.mxu3 }
  0xe3   :  { %v587_v36 = vpop.f32.mrf.mxu1 }
  0xe5   :  { %v452_v29 = vpop.f32.mrf.mxu2 }
  0xe6   :  { %v538_v32 = vpop.f32.mrf.mxu0  ;;  %v453_v22 = vadd.f32 %v452_v29, %v380_v9 }
  0xe7   :  { %v539_v23 = vadd.f32 %v538_v32, %v495_v50  ;;  %v1180_v50 = vand.u32 4294901760, %v2529_v17 }
  0xe9   :  { %v2487_v12 = vpop.f32.mrf.mxu3  ;;  %v588_v53 = vadd.f32 %v587_v36, %v539_v23  ;;  %v1181_v23 = vsub.f32 %v2529_v17, %v1180_v50 }
  0xeb   :  { %v593_v18 = vpop.f32.mrf.mxu1  ;;  %v1182_v11 = vand.u32 4294901760, %v1181_v23 }
  0xed   :  { %v2489_v34 = vpop.f32.mrf.mxu2  ;;  %1183 = vmatpush.msrb.mxu3 %v1182_v11 }
  0xee   :  { %v543_v16 = vpop.f32.mrf.mxu0  ;;  %v461_v48 = vadd.f32 %v2489_v34, %v384_v43 }
  0xef   :  { %v544_v59 = vadd.f32 %v543_v16, %v499_v21  ;;  %v507_v16 = vadd.f32 %v2481_v26, %v453_v22 }
  0xf0   :  { %v511_v34 = vadd.f32 %v2487_v12, %v461_v48 }
  0xf1   :  { %v2491_v40 = vpop.f32.mrf.mxu3  ;;  %v594_v10 = vadd.f32 %v593_v18, %v544_v59  ;;  %v302_v18 = vadd.f32 %v2464_v4, %v248_v62 }
  0xf3   :  { %v599_v15 = vpop.f32.mrf.mxu1  ;;  %v346_v20 = vadd.f32 %v2479_v7, %v302_v18 }
  0xf5   :  { %v2493_v2 = vpop.f32.mrf.mxu2 }
  0xf6   :  { %v548_v24 = vpop.f32.mrf.mxu0 }
  0xf7   :  { %v549_v33 = vadd.f32 %v548_v24, %v503_v31  ;;  %v388_v24 = vadd.f32 %v2483_v27, %v346_v20 }
  0xf9   :  { %v683_v47 = vpop.f32.mrf.mxu3  ;;  %v600_v38 = vadd.f32 %v599_v15, %v549_v33  ;;  %v469_v12 = vadd.f32 %v2493_v2, %v388_v24 }
  0xfb   :  { %v605_v41 = vpop.f32.mrf.mxu1 }
  0xfd   :  { %v641_v61 = vpop.f32.mrf.mxu2 }
  0xfe   :  { %v642_v30 = vadd.f32 %v641_v61, %v588_v53  ;;  %v553_v13 = vpop.f32.mrf.mxu0 }
  0xff   :  { %v554_v45 = vadd.f32 %v553_v13, %v507_v16 }
 0x100   :  { %v684_v35 = vadd.f32 %v683_v47, %v642_v30 }
 0x101   :  { %v687_v54 = vpop.f32.mrf.mxu3  ;;  %v606_v47 = vadd.f32 %v605_v41, %v554_v45 }
 0x102   :  { %v2521_v39 = vadd.f32 %v2508_v55, %v684_v35 }
 0x103   :  { %v611_v56 = vpop.f32.mrf.mxu1 }
 0x104   :  { %v722_v42 = vrot.slane %v2521_v39, 1 }
 0x105   :  { %v645_v1 = vpop.f32.mrf.mxu2 }
 0x106   :  { %v646_v32 = vadd.f32 %v645_v1, %v594_v10  ;;  %v558_v46 = vpop.f32.mrf.mxu0 }
 0x107   :  { %v559_v59 = vadd.f32 %v558_v46, %v511_v34 }
 0x108   :  { %v688_v57 = vadd.f32 %v687_v54, %v646_v32  ;;  %v515_v32 = vadd.f32 %v2491_v40, %v469_v12 }
 0x109   :  { %v691_v36 = vpop.f32.mrf.mxu3  ;;  %v612_v8 = vadd.f32 %v611_v56, %v559_v59 }
 0x10a   :  { %v711_v19 = vadd.f32 %v2508_v55, %v688_v57 }
 0x10b   :  { %v617_v13 = vpop.f32.mrf.mxu1 }
 0x10c   :  { %v723_v6 = vrot.slane %v711_v19, 1 }
 0x10d   :  { %v649_v29 = vpop.f32.mrf.mxu2 }
 0x10e   :  { %v650_v25 = vadd.f32 %v649_v29, %v600_v38  ;;  %v724_v5 = vsel %vm54_vm1, %v722_v42, %v723_v6  ;;  %v563_v60 = vpop.f32.mrf.mxu0 }
 0x10f   :  { %v2540_v61 = vmax.f32 %v2521_v39, %v724_v5  ;;  %v564_v57 = vadd.f32 %v563_v60, %v515_v32 }
 0x110   :  { %v692_v44 = vadd.f32 %v691_v36, %v650_v25 }
 0x111   :  { %v695_v52 = vpop.f32.mrf.mxu3  ;;  %v755_v51 = vrot.slane %v2540_v61, 2  ;;  %v618_v28 = vadd.f32 %v617_v13, %v564_v57 }
 0x112   :  { %v712_v26 = vadd.f32 %v2508_v55, %v692_v44 }
 0x114   :  { %v725_v49 = vrot.slane %v712_v26, 1 }
 0x115   :  { %v653_v4 = vpop.f32.mrf.mxu2 }
 0x116   :  { %v726_v3 = vsel %vm54_vm1, %v723_v6, %v725_v49  ;;  %v654_v21 = vadd.f32 %v653_v4, %v606_v47 }
 0x117   :  { %v2546_v7 = vmax.f32 %v711_v19, %v726_v3 }
 0x118   :  { %v696_v0 = vadd.f32 %v695_v52, %v654_v21 }
 0x119   :  { %v756_v53 = vrot.slane %v2546_v7, 2  ;;  %v699_v15 = vpop.f32.mrf.mxu3 }
 0x11a   :  { %v713_v54 = vadd.f32 %v2508_v55, %v696_v0 }
 0x11b   :  { %v757_v27 = vsel %vm754_vm3, %v755_v51, %v756_v53 }
 0x11c   :  { %v727_v10 = vrot.slane %v713_v54, 1  ;;  %v771_v30 = vsel %vm770_vm4, %v757_v27, 0 }
 0x11d   :  { %v657_v1 = vpop.f32.mrf.mxu2  ;;  %v2556_v31 = vand.u32 4294901760, %v771_v30 }
 0x11e   :  { %v728_v2 = vsel %vm54_vm1, %v725_v49, %v727_v10  ;;  %v658_v9 = vadd.f32 %v657_v1, %v612_v8 }
 0x11f   :  { %v2560_v33 = vmax.f32 %v712_v26, %v728_v2  ;;  %872 = vmatmul.f32.vlgmr.msrb.gmra.mxu1 %v2556_v31  ;;  %v802_v35 = vsub.f32 %v771_v30, %v2556_v31 }
 0x120   :  { %v700_v58 = vadd.f32 %v699_v15, %v658_v9  ;;  %1274 = vmatpush.msrb.mxu1 %v2515_v14 }
 0x121   :  { %v758_v63 = vrot.slane %v2560_v33, 2  ;;  %916 = vmatmul.f32.vlgmr.msra.gmra.mxu2 %v802_v35  ;;  %v803_v22 = vand.u32 4294901760, %v802_v35  ;;  %v703_v41 = vpop.f32.mrf.mxu3 }
 0x122   :  { %v714_v40 = vadd.f32 %v2508_v55, %v700_v58  ;;  %1330 = vmatpush.msra.mxu2 %v1180_v50 }
 0x123   :  { %965 = vmatmul.f32.vlgmr.msra.gmra.mxu3 %v803_v22  ;;  %v804_v19 = vsub.f32 %v802_v35, %v803_v22  ;;  %v759_v36 = vsel %vm754_vm3, %v756_v53, %v758_v63 }
 0x124   :  { %v729_v37 = vrot.slane %v714_v40, 1  ;;  %v773_v38 = vsel %vm770_vm4, %v759_v36, 0  ;;  %1372 = vmatpush.msra.mxu3 %v2515_v14 }
 0x125   :  { %v661_v62 = vpop.f32.mrf.mxu2  ;;  %v805_v29 = vand.u32 4294901760, %v804_v19  ;;  %v2570_v16 = vand.u32 4294901760, %v773_v38  ;;  %v1089_v19 = vsel %vm770_vm4, %v2560_v33, 0 }
 0x126   :  { %v730_v6 = vsel %vm54_vm1, %v727_v10, %v729_v37  ;;  %v662_v25 = vadd.f32 %v661_v62, %v618_v28  ;;  %v1085_v10 = vsel %vm770_vm4, %v2540_v61, 0  ;;  %v1087_v61 = vsel %vm770_vm4, %v2546_v7, 0 }
 0x127   :  { %v2573_v43 = vmax.f32 %v713_v54, %v730_v6  ;;  %806 = vmatmul.f32.vlgmr.msrb.gmra.mxu0 %v805_v29  ;;  %876 = vmatmul.f32.gmra.mxu1 %v2570_v16  ;;  %v810_v45 = vsub.f32 %v773_v38, %v2570_v16  ;;  %v2615_v32 = vand.u32 4294901760, %v1085_v10  ;;  %v2626_v13 = vand.u32 4294901760, %v1087_v61 }
 0x128   :  { %v704_v44 = vadd.f32 %v703_v41, %v662_v25  ;;  %1226 = vmatpush.msrb.mxu0 %v2529_v17 }
 0x129   :  { %v760_v14 = vrot.slane %v2573_v43, 2  ;;  %921 = vmatmul.f32.gmra.mxu2 %v810_v45  ;;  %v811_v18 = vand.u32 4294901760, %v810_v45  ;;  %v2620_v9 = vsub.f32 %v1085_v10, %v2615_v32  ;;  %v1091_v41 = vsel %vm770_vm4, %v2573_v43, 0 }
 0x12a   :  { %v715_v48 = vadd.f32 %v2508_v55, %v704_v44  ;;  %v1138_v6 = vand.u32 4294901760, %v1091_v41 }
 0x12b   :  { %971 = vmatmul.f32.gmra.mxu3 %v811_v18  ;;  %v812_v5 = vsub.f32 %v810_v45, %v811_v18  ;;  %v761_v26 = vsel %vm754_vm3, %v758_v63, %v760_v14  ;;  %v1116_v58 = vand.u32 4294901760, %v2620_v9 }
 0x12c   :  { %v731_v52 = vrot.slane %v715_v48, 1  ;;  %v775_v20 = vsel %vm770_vm4, %v761_v26, 0  ;;  %v1139_v45 = vsub.f32 %v1091_v41, %v1138_v6 }
 0x12d   :  { %v813_v46 = vand.u32 4294901760, %v812_v5  ;;  %v2582_v47 = vand.u32 4294901760, %v775_v20  ;;  %v1117_v22 = vsub.f32 %v2620_v9, %v1116_v58 }
 0x12e   :  { %v732_v49 = vsel %vm54_vm1, %v729_v37, %v731_v52  ;;  %v740_v17 = vsel %vm54_vm1, %v731_v52, %v722_v42  ;;  %v1130_v37 = vand.u32 4294901760, %v1089_v19 }
 0x12f   :  { %v2588_v50 = vmax.f32 %v714_v40, %v732_v49  ;;  %v2590_v4 = vmax.f32 %v715_v48, %v740_v17  ;;  %814 = vmatmul.f32.gmra.mxu0 %v813_v46  ;;  %880 = vmatmul.f32.gmra.mxu1 %v2582_v47  ;;  %v818_v55 = vsub.f32 %v775_v20, %v2582_v47  ;;  %v1118_v36 = vand.u32 4294901760, %v1117_v22 }
 0x130   :  { %v1123_v40 = vsub.f32 %v1087_v61, %v2626_v13  ;;  %v1131_v62 = vsub.f32 %v1089_v19, %v1130_v37 }
 0x131   :  { %v762_v34 = vrot.slane %v2588_v50, 2  ;;  %v764_v3 = vrot.slane %v2590_v4, 2  ;;  %926 = vmatmul.f32.gmra.mxu2 %v818_v55  ;;  %v819_v21 = vand.u32 4294901760, %v818_v55  ;;  %v1093_v44 = vsel %vm770_vm4, %v2588_v50, 0 }
 0x132   :  { %v1124_v28 = vand.u32 4294901760, %v1123_v40  ;;  %v1132_v29 = vand.u32 4294901760, %v1131_v62  ;;  %v1095_v5 = vsel %vm770_vm4, %v2590_v4, 0 }
 0x133   :  { %977 = vmatmul.f32.gmra.mxu3 %v819_v21  ;;  %v820_v23 = vsub.f32 %v818_v55, %v819_v21  ;;  %v763_v39 = vsel %vm754_vm3, %v760_v14, %v762_v34  ;;  %v765_v42 = vsel %vm754_vm3, %v762_v34, %v764_v3  ;;  %v768_v12 = vsel %vm754_vm3, %v764_v3, %v755_v51 }
 0x134   :  { %v777_v24 = vsel %vm770_vm4, %v763_v39, 0  ;;  %v779_v56 = vsel %vm770_vm4, %v765_v42, 0  ;;  %v782_v27 = vsel %vm770_vm4, %v768_v12, 0  ;;  %v1125_v38 = vsub.f32 %v1123_v40, %v1124_v28 }
 0x135   :  { %v821_v59 = vand.u32 4294901760, %v820_v23  ;;  %v2600_v0 = vand.u32 4294901760, %v777_v24  ;;  %v2602_v11 = vand.u32 4294901760, %v779_v56  ;;  %v2613_v1 = vand.u32 4294901760, %v782_v27 }
 0x136   :  { %v1126_v33 = vand.u32 4294901760, %v1125_v38  ;;  %v1133_v25 = vsub.f32 %v1131_v62, %v1132_v29  ;;  %v1140_v14 = vand.u32 4294901760, %v1139_v45  ;;  %v1154_v26 = vand.u32 4294901760, %v1095_v5 }
 0x137   :  { %822 = vmatmul.f32.gmra.mxu0 %v821_v59  ;;  %884 = vmatmul.f32.gmra.mxu1 %v2600_v0  ;;  %v826_v53 = vsub.f32 %v777_v24, %v2600_v0  ;;  %v834_v15 = vsub.f32 %v779_v56, %v2602_v11  ;;  %v842_v2 = vsub.f32 %v782_v27, %v2613_v1 }
 0x138   :  { %v1134_v43 = vand.u32 4294901760, %v1133_v25  ;;  %v1141_v18 = vsub.f32 %v1139_v45, %v1140_v14 }
 0x139   :  { %931 = vmatmul.f32.gmra.mxu2 %v826_v53  ;;  %v827_v54 = vand.u32 4294901760, %v826_v53  ;;  %v835_v60 = vand.u32 4294901760, %v834_v15  ;;  %v843_v57 = vand.u32 4294901760, %v842_v2 }
 0x13a   :  { %v1142_v52 = vand.u32 4294901760, %v1141_v18 }
 0x13b   :  { %983 = vmatmul.f32.gmra.mxu3 %v827_v54  ;;  %v828_v8 = vsub.f32 %v826_v53, %v827_v54  ;;  %v836_v51 = vsub.f32 %v834_v15, %v835_v60  ;;  %v844_v63 = vsub.f32 %v842_v2, %v843_v57 }
 0x13d   :  { %v829_v30 = vand.u32 4294901760, %v828_v8  ;;  %v837_v35 = vand.u32 4294901760, %v836_v51  ;;  %v845_v7 = vand.u32 4294901760, %v844_v63 }
 0x13f   :  { %830 = vmatmul.f32.gmra.mxu0 %v829_v30  ;;  %888 = vmatmul.f32.gmra.mxu1 %v2602_v11 }
 0x141   :  { %936 = vmatmul.f32.gmra.mxu2 %v834_v15 }
 0x143   :  { %989 = vmatmul.f32.gmra.mxu3 %v835_v60 }
 0x147   :  { %838 = vmatmul.f32.gmra.mxu0 %v837_v35  ;;  %892 = vmatmul.f32.gmra.mxu1 %v2613_v1 }
 0x149   :  { %941 = vmatmul.f32.gmra.mxu2 %v842_v2 }
 0x14b   :  { %995 = vmatmul.f32.gmra.mxu3 %v843_v57 }
 0x14f   :  { %846 = vmatmul.f32.gmra.mxu0 %v845_v7  ;;  %1061 = vmatmul.f32.vlgmr.msra.gmra.mxu1 %v2556_v31 }
 0x151   :  { %1119 = vmatmul.f32.vlgmr.msrb.gmra.mxu2 %v1118_v36 }
 0x153   :  { %1185 = vmatmul.f32.vlgmr.msrb.gmra.mxu3 %v2615_v32 }
 0x157   :  { %1019 = vmatmul.f32.vlgmr.msra.gmra.mxu0 %v2556_v31  ;;  %1065 = vmatmul.f32.gmra.mxu1 %v2570_v16  ;;  %v1146_v31 = vand.u32 4294901760, %v1093_v44 }
 0x159   :  { %1127 = vmatmul.f32.gmra.mxu2 %v1126_v33  ;;  %v1147_v48 = vsub.f32 %v1093_v44, %v1146_v31 }
 0x15b   :  { %1189 = vmatmul.f32.gmra.mxu3 %v2626_v13  ;;  %v1148_v20 = vand.u32 4294901760, %v1147_v48 }
 0x15d   :  { %v1149_v46 = vsub.f32 %v1147_v48, %v1148_v20 }
 0x15f   :  { %1023 = vmatmul.f32.gmra.mxu0 %v2570_v16  ;;  %1069 = vmatmul.f32.gmra.mxu1 %v2582_v47  ;;  %v1155_v16 = vsub.f32 %v1095_v5, %v1154_v26  ;;  %v1150_v49 = vand.u32 4294901760, %v1149_v46 }
 0x161   :  { %1135 = vmatmul.f32.gmra.mxu2 %v1134_v43  ;;  %v1156_v17 = vand.u32 4294901760, %v1155_v16 }
 0x163   :  { %1193 = vmatmul.f32.gmra.mxu3 %v1130_v37  ;;  %v1157_v50 = vsub.f32 %v1155_v16, %v1156_v17 }
 0x167   :  { %1027 = vmatmul.f32.gmra.mxu0 %v2582_v47  ;;  %1073 = vmatmul.f32.gmra.mxu1 %v2600_v0  ;;  %v1158_v47 = vand.u32 4294901760, %v1157_v50 }
 0x169   :  { %1143 = vmatmul.f32.gmra.mxu2 %v1142_v52 }
 0x16b   :  { %1197 = vmatmul.f32.gmra.mxu3 %v1138_v6 }
 0x16f   :  { %1031 = vmatmul.f32.gmra.mxu0 %v2600_v0  ;;  %1077 = vmatmul.f32.gmra.mxu1 %v2602_v11 }
 0x171   :  { %1151 = vmatmul.f32.gmra.mxu2 %v1150_v49 }
 0x173   :  { %1201 = vmatmul.f32.gmra.mxu3 %v1146_v31 }
 0x177   :  { %1035 = vmatmul.f32.gmra.mxu0 %v2602_v11  ;;  %1081 = vmatmul.f32.gmra.mxu1 %v2613_v1 }
 0x179   :  { %1159 = vmatmul.f32.gmra.mxu2 %v1158_v47 }
 0x17b   :  { %1205 = vmatmul.f32.gmra.mxu3 %v1154_v26 }
 0x17f   :  { %1039 = vmatmul.f32.gmra.mxu0 %v2613_v1  ;;  %1278 = vmatmul.f32.vlgmr.msrb.gmra.mxu1 %v1116_v58 }
 0x181   :  { %1332 = vmatmul.f32.vlgmr.msra.gmra.mxu2 %v2615_v32 }
 0x183   :  { %1374 = vmatmul.f32.vlgmr.msra.gmra.mxu3 %v2615_v32 }
 0x187   :  { %1229 = vmatmul.f32.vlgmr.msrb.gmra.mxu0 %v2620_v9  ;;  %1284 = vmatmul.f32.gmra.mxu1 %v1124_v28  ;;  %v1439_v28 = vld [vmem:[%s2891_s7] sm:$0xff] }
 0x189   :  { %1336 = vmatmul.f32.gmra.mxu2 %v2626_v13 }
 0x18b   :  { %1378 = vmatmul.f32.gmra.mxu3 %v2626_v13 }
 0x18f   :  { %1234 = vmatmul.f32.gmra.mxu0 %v1123_v40  ;;  %1290 = vmatmul.f32.gmra.mxu1 %v1132_v29 }
 0x191   :  { %1340 = vmatmul.f32.gmra.mxu2 %v1130_v37 }
 0x193   :  { %1382 = vmatmul.f32.gmra.mxu3 %v1130_v37 }
 0x197   :  { %1239 = vmatmul.f32.gmra.mxu0 %v1131_v62  ;;  %1296 = vmatmul.f32.gmra.mxu1 %v1140_v14  ;;  %v1477_v62 = vand.u32 4294901760, %v1439_v28 }
 0x199   :  { %1344 = vmatmul.f32.gmra.mxu2 %v1138_v6  ;;  %1478 = vmatpush.msra.mxu0 %v1477_v62  ;;  %v1541_v29 = vsub.f32 %v1439_v28, %v1477_v62 }
 0x19a   :  { %1630 = vmatpush.msrb.mxu3 %v1477_v62 }
 0x19b   :  { %1386 = vmatmul.f32.gmra.mxu3 %v1138_v6  ;;  %v1542_v6 = vand.u32 4294901760, %v1541_v29  ;;  %1585 = vmatpush.msrb.mxu2 %v1541_v29 }
 0x19c   :  { %v2657_v4 = vpop.f32.mrf.mxu1 }
 0x19d   :  { %v1543_v25 = vsub.f32 %v1541_v29, %v1542_v6  ;;  %1683 = vmatpush.msrb.mxu0 %v1542_v6 }
 0x19f   :  { %1244 = vmatmul.f32.gmra.mxu0 %v1139_v45  ;;  %1302 = vmatmul.f32.gmra.mxu1 %v1148_v20  ;;  %v1544_v43 = vand.u32 4294901760, %v1543_v25 }
 0x1a1   :  { %1348 = vmatmul.f32.gmra.mxu2 %v1146_v31  ;;  %1545 = vmatpush.msra.mxu1 %v1544_v43 }
 0x1a3   :  { %1390 = vmatmul.f32.gmra.mxu3 %v1146_v31  ;;  %1722 = vmatpush.msrb.mxu1 %v1477_v62 }
 0x1a4   :  { %v2659_v55 = vpop.f32.mrf.mxu0  ;;  %v2661_v34 = vpop.f32.mrf.mxu1 }
 0x1a5   :  { %v2663_v3 = vpop.f32.mrf.mxu2  ;;  %v874_v5 = vadd.f32 %v2657_v4, %v2659_v55 }
 0x1a6   :  { %v2665_v21 = vpop.f32.mrf.mxu3 }
 0x1a7   :  { %1249 = vmatmul.f32.gmra.mxu0 %v1147_v48  ;;  %1308 = vmatmul.f32.gmra.mxu1 %v1156_v17  ;;  %v918_v20 = vadd.f32 %v2663_v3, %v874_v5 }
 0x1a9   :  { %1352 = vmatmul.f32.gmra.mxu2 %v1154_v26  ;;  %v967_v49 = vadd.f32 %v2665_v21, %v918_v20 }
 0x1ab   :  { %1394 = vmatmul.f32.gmra.mxu3 %v1154_v26 }
 0x1ac   :  { %v2667_v23 = vpop.f32.mrf.mxu0  ;;  %v2669_v39 = vpop.f32.mrf.mxu1 }
 0x1ad   :  { %v2671_v42 = vpop.f32.mrf.mxu2  ;;  %v878_v17 = vadd.f32 %v2661_v34, %v2667_v23 }
 0x1ae   :  { %v2673_v24 = vpop.f32.mrf.mxu3 }
 0x1af   :  { %1254 = vmatmul.f32.gmra.mxu0 %v1155_v16  ;;  %v923_v4 = vadd.f32 %v2671_v42, %v878_v17 }
 0x1b1   :  { %v973_v3 = vadd.f32 %v2673_v24, %v923_v4 }
 0x1b4   :  { %v2675_v56 = vpop.f32.mrf.mxu0  ;;  %v885_v59 = vpop.f32.mrf.mxu1 }
 0x1b5   :  { %v2677_v0 = vpop.f32.mrf.mxu2 }
 0x1b6   :  { %v2679_v11 = vpop.f32.mrf.mxu3 }
 0x1bc   :  { %v831_v53 = vpop.f32.mrf.mxu0  ;;  %v889_v12 = vpop.f32.mrf.mxu1 }
 0x1bd   :  { %v886_v54 = vadd.f32 %v885_v59, %v831_v53  ;;  %v932_v15 = vpop.f32.mrf.mxu2 }
 0x1be   :  { %v984_v27 = vpop.f32.mrf.mxu3 }
 0x1bf   :  { %v933_v8 = vadd.f32 %v932_v15, %v886_v54  ;;  %v882_v54 = vadd.f32 %v2669_v39, %v2675_v56 }
 0x1c1   :  { %v2681_v10 = vadd.f32 %v984_v27, %v933_v8  ;;  %v928_v27 = vadd.f32 %v2677_v0, %v882_v54 }
 0x1c4   :  { %v839_v30 = vpop.f32.mrf.mxu0  ;;  %v893_v60 = vpop.f32.mrf.mxu1 }
 0x1c5   :  { %v890_v1 = vadd.f32 %v889_v12, %v839_v30  ;;  %v937_v32 = vpop.f32.mrf.mxu2 }
 0x1c6   :  { %v990_v51 = vpop.f32.mrf.mxu3 }
 0x1c7   :  { %v938_v2 = vadd.f32 %v937_v32, %v890_v1 }
 0x1c9   :  { %v2683_v9 = vadd.f32 %v990_v51, %v938_v2 }
 0x1cc   :  { %v847_v61 = vpop.f32.mrf.mxu0  ;;  %v1062_v35 = vpop.f32.mrf.mxu1 }
 0x1cd   :  { %v894_v57 = vadd.f32 %v893_v60, %v847_v61  ;;  %v942_v58 = vpop.f32.mrf.mxu2  ;;  %v979_v60 = vadd.f32 %v2679_v11, %v928_v27  ;;  %v2722_v11 = vld [vmem:[%s2890_s6] ss:$0 sm:$0xff] }
 0x1ce   :  { %v996_v13 = vpop.f32.mrf.mxu3 }
 0x1cf   :  { %v943_v63 = vadd.f32 %v942_v58, %v894_v57 }
 0x1d1   :  { %v2685_v22 = vadd.f32 %v996_v13, %v943_v63 }
 0x1d4   :  { %v1020_v40 = vpop.f32.mrf.mxu0  ;;  %v1066_v19 = vpop.f32.mrf.mxu1 }
 0x1d5   :  { %v1120_v7 = vpop.f32.mrf.mxu2  ;;  %v1021_v59 = vadd.f32 %v1020_v40, %v967_v49 }
 0x1d6   :  { %v1186_v36 = vpop.f32.mrf.mxu3 }
 0x1d7   :  { %v1063_v55 = vadd.f32 %v1062_v35, %v1021_v59 }
 0x1d9   :  { %v1121_v34 = vadd.f32 %v1120_v7, %v1063_v55 }
 0x1db   :  { %v1187_v8 = vadd.f32 %v1186_v36, %v1121_v34 }
 0x1dc   :  { %v1024_v37 = vpop.f32.mrf.mxu0  ;;  %v1070_v38 = vpop.f32.mrf.mxu1 }
 0x1dd   :  { %v1128_v41 = vpop.f32.mrf.mxu2  ;;  %v1025_v23 = vadd.f32 %v1024_v37, %v973_v3 }
 0x1de   :  { %v1190_v33 = vpop.f32.mrf.mxu3 }
 0x1df   :  { %v1067_v30 = vadd.f32 %v1066_v19, %v1025_v23 }
 0x1e1   :  { %v1129_v2 = vadd.f32 %v1128_v41, %v1067_v30 }
 0x1e3   :  { %v1191_v56 = vadd.f32 %v1190_v33, %v1129_v2 }
 0x1e4   :  { %v1028_v45 = vpop.f32.mrf.mxu0  ;;  %v1074_v44 = vpop.f32.mrf.mxu1 }
 0x1e5   :  { %v1136_v14 = vpop.f32.mrf.mxu2  ;;  %v1029_v61 = vadd.f32 %v1028_v45, %v979_v60 }
 0x1e6   :  { %v1194_v31 = vpop.f32.mrf.mxu3 }
 0x1e7   :  { %v1071_v35 = vadd.f32 %v1070_v38, %v1029_v61 }
 0x1e9   :  { %v1137_v0 = vadd.f32 %v1136_v14, %v1071_v35 }
 0x1eb   :  { %v1195_v62 = vadd.f32 %v1194_v31, %v1137_v0 }
 0x1ec   :  { %v1032_v18 = vpop.f32.mrf.mxu0  ;;  %v2690_v48 = vpop.f32.mrf.mxu1 }
 0x1ed   :  { %v1144_v26 = vpop.f32.mrf.mxu2  ;;  %v1033_v19 = vadd.f32 %v1032_v18, %v2681_v10 }
 0x1ee   :  { %v2694_v52 = vpop.f32.mrf.mxu3 }
 0x1ef   :  { %v1075_v41 = vadd.f32 %v1074_v44, %v1033_v19 }
 0x1f1   :  { %v1145_v14 = vadd.f32 %v1144_v26, %v1075_v41 }
 0x1f3   :  { %v1199_v4 = vadd.f32 %v2694_v52, %v1145_v14 }
 0x1f4   :  { %v1036_v16 = vpop.f32.mrf.mxu0  ;;  %v2697_v46 = vpop.f32.mrf.mxu1 }
 0x1f5   :  { %v2702_v50 = vpop.f32.mrf.mxu2  ;;  %v1037_v45 = vadd.f32 %v1036_v16, %v2683_v9 }
 0x1f6   :  { %v2704_v47 = vpop.f32.mrf.mxu3 }
 0x1f7   :  { %v1079_v49 = vadd.f32 %v2690_v48, %v1037_v45 }
 0x1f9   :  { %v1153_v34 = vadd.f32 %v2702_v50, %v1079_v49 }
 0x1fc   :  { %v2707_v53 = vpop.f32.mrf.mxu0  ;;  %v1279_v12 = vpop.f32.mrf.mxu1 }
 0x1fd   :  { %v2712_v21 = vpop.f32.mrf.mxu2  ;;  %v1041_v48 = vadd.f32 %v2707_v53, %v2685_v22 }
 0x1fe   :  { %v2714_v15 = vpop.f32.mrf.mxu3 }
 0x1ff   :  { %v1083_v50 = vadd.f32 %v2697_v46, %v1041_v48 }
 0x204   :  { %v1230_v42 = vpop.f32.mrf.mxu0  ;;  %v1285_v51 = vpop.f32.mrf.mxu1 }
 0x205   :  { %v1231_v1 = vadd.f32 %v1230_v42, %v1187_v8  ;;  %v1333_v32 = vpop.f32.mrf.mxu2 }
 0x206   :  { %v1375_v24 = vpop.f32.mrf.mxu3 }
 0x207   :  { %v1280_v39 = vadd.f32 %v1279_v12, %v1231_v1 }
 0x209   :  { %v1334_v57 = vadd.f32 %v1333_v32, %v1280_v39  ;;  %v1203_v32 = vadd.f32 %v2704_v47, %v1153_v34 }
 0x20b   :  { %v1376_v7 = vadd.f32 %v1375_v24, %v1334_v57 }
 0x20c   :  { %v1235_v58 = vpop.f32.mrf.mxu0  ;;  %v1291_v28 = vpop.f32.mrf.mxu1 }
 0x20d   :  { %v1236_v13 = vadd.f32 %v1235_v58, %v1191_v56  ;;  %v1337_v63 = vpop.f32.mrf.mxu2  ;;  %v2725_v38 = vadd.f32 %v2722_v11, %v1376_v7  ;;  %v1161_v58 = vadd.f32 %v2712_v21, %v1083_v50 }
 0x20e   :  { %v1379_v40 = vpop.f32.mrf.mxu3 }
 0x20f   :  { %v1286_v36 = vadd.f32 %v1285_v51, %v1236_v13  ;;  %v1414_v18 = vrot.slane %v2725_v38, 2 }
 0x211   :  { %v1338_v37 = vadd.f32 %v1337_v63, %v1286_v36  ;;  %v1207_v36 = vadd.f32 %v2714_v15, %v1161_v58 }
 0x213   :  { %v1380_v33 = vadd.f32 %v1379_v40, %v1338_v37 }
 0x214   :  { %v1240_v29 = vpop.f32.mrf.mxu0  ;;  %v1297_v59 = vpop.f32.mrf.mxu1 }
 0x215   :  { %v1403_v6 = vadd.f32 %v2722_v11, %v1380_v33  ;;  %v1241_v25 = vadd.f32 %v1240_v29, %v1195_v62  ;;  %v1341_v10 = vpop.f32.mrf.mxu2 }
 0x216   :  { %v1383_v43 = vpop.f32.mrf.mxu3 }
 0x217   :  { %v1415_v5 = vrot.slane %v1403_v6, 2  ;;  %v1292_v20 = vadd.f32 %v1291_v28, %v1241_v25 }
 0x219   :  { %v1416_v44 = vsel %vm754_vm3, %v1414_v18, %v1415_v5  ;;  %v1342_v31 = vadd.f32 %v1341_v10, %v1292_v20 }
 0x21a   :  { %v1433_v17 = vmax.f32 %v2725_v38, %v1416_v44 }
 0x21b   :  { %v1384_v55 = vadd.f32 %v1383_v43, %v1342_v31 }
 0x21c   :  { %v1445_v9 = vsel %vm770_vm4, %v1433_v17, 0  ;;  %v1245_v26 = vpop.f32.mrf.mxu0  ;;  %v1303_v22 = vpop.f32.mrf.mxu1 }
 0x21d   :  { %v1404_v16 = vadd.f32 %v2722_v11, %v1384_v55  ;;  %v1246_v12 = vadd.f32 %v1245_v26, %v1199_v4  ;;  %v1345_v3 = vpop.f32.mrf.mxu2  ;;  %v2738_v54 = vand.u32 4294901760, %v1445_v9 }
 0x21e   :  { %v1387_v23 = vpop.f32.mrf.mxu3 }
 0x21f   :  { %v1417_v27 = vrot.slane %v1404_v16, 2  ;;  %v1298_v8 = vadd.f32 %v1297_v59, %v1246_v12  ;;  %1547 = vmatmul.f32.vlgmr.msra.gmra.mxu1 %v2738_v54  ;;  %v1480_v52 = vsub.f32 %v1445_v9, %v2738_v54 }
 0x221   :  { %v1418_v30 = vsel %vm754_vm3, %v1415_v5, %v1417_v27  ;;  %v1346_v42 = vadd.f32 %v1345_v3, %v1298_v8  ;;  %1588 = vmatmul.f32.vlgmr.msrb.gmra.mxu2 %v1480_v52  ;;  %v1481_v60 = vand.u32 4294901760, %v1480_v52 }
 0x222   :  { %v1434_v1 = vmax.f32 %v1403_v6, %v1418_v30 }
 0x223   :  { %v1388_v51 = vadd.f32 %v1387_v23, %v1346_v42  ;;  %1634 = vmatmul.f32.vlgmr.msrb.gmra.mxu3 %v1481_v60  ;;  %v1482_v24 = vsub.f32 %v1480_v52, %v1481_v60 }
 0x224   :  { %v1250_v53 = vpop.f32.mrf.mxu0  ;;  %v1448_v2 = vsel %vm770_vm4, %v1434_v1, 0  ;;  %v1309_v25 = vpop.f32.mrf.mxu1 }
 0x225   :  { %v1405_v61 = vadd.f32 %v2722_v11, %v1388_v51  ;;  %v1251_v39 = vadd.f32 %v1250_v53, %v1203_v32  ;;  %v1483_v56 = vand.u32 4294901760, %v1482_v24  ;;  %v2750_v35 = vand.u32 4294901760, %v1448_v2  ;;  %v1349_v57 = vpop.f32.mrf.mxu2 }
 0x226   :  { %v1391_v63 = vpop.f32.mrf.mxu3 }
 0x227   :  { %v1419_v13 = vrot.slane %v1405_v61, 2  ;;  %v1304_v47 = vadd.f32 %v1303_v22, %v1251_v39  ;;  %1484 = vmatmul.f32.vlgmr.msra.gmra.mxu0 %v1483_v56  ;;  %1550 = vmatmul.f32.gmra.mxu1 %v2750_v35  ;;  %v1487_v46 = vsub.f32 %v1448_v2, %v2750_v35 }
 0x229   :  { %v1420_v40 = vsel %vm754_vm3, %v1417_v27, %v1419_v13  ;;  %v1350_v0 = vadd.f32 %v1349_v57, %v1304_v47  ;;  %1592 = vmatmul.f32.gmra.mxu2 %v1487_v46  ;;  %v1488_v19 = vand.u32 4294901760, %v1487_v46 }
 0x22a   :  { %v1435_v7 = vmax.f32 %v1404_v16, %v1420_v40 }
 0x22b   :  { %v1392_v28 = vadd.f32 %v1391_v63, %v1350_v0  ;;  %1639 = vmatmul.f32.gmra.mxu3 %v1488_v19  ;;  %v1489_v37 = vsub.f32 %v1487_v46, %v1488_v19  ;;  %v2183_v63 = vld [vmem:[%s2892_s8] ss:$0 sm:$0xff]  ;;  %s2239_s8 = smov 116  }
 0x22c   :  { %v1255_v21 = vpop.f32.mrf.mxu0  ;;  %v1451_v62 = vsel %vm770_vm4, %v1435_v7, 0 }
 0x22d   :  { %v1406_v41 = vadd.f32 %v2722_v11, %v1392_v28  ;;  %v1256_v33 = vadd.f32 %v1255_v21, %v1207_v36  ;;  %v1490_v29 = vand.u32 4294901760, %v1489_v37  ;;  %v1494_v6 = vand.u32 4294901760, %v1451_v62  ;;  %v1353_v14 = vpop.f32.mrf.mxu2 }
 0x22e   :  { %v1395_v31 = vpop.f32.mrf.mxu3 }
 0x22f   :  { %v1421_v10 = vrot.slane %v1406_v41, 2  ;;  %v1310_v45 = vadd.f32 %v1309_v25, %v1256_v33  ;;  %1491 = vmatmul.f32.gmra.mxu0 %v1490_v29  ;;  %1554 = vmatmul.f32.gmra.mxu1 %v1494_v6  ;;  %v1495_v43 = vsub.f32 %v1451_v62, %v1494_v6 }
 0x231   :  { %v1422_v15 = vsel %vm754_vm3, %v1419_v13, %v1421_v10  ;;  %v1354_v5 = vadd.f32 %v1353_v14, %v1310_v45  ;;  %1597 = vmatmul.f32.gmra.mxu2 %v1495_v43  ;;  %v1496_v20 = vand.u32 4294901760, %v1495_v43 }
 0x232   :  { %v1436_v44 = vmax.f32 %v1405_v61, %v1422_v15 }
 0x233   :  { %v1396_v49 = vadd.f32 %v1395_v31, %v1354_v5  ;;  %1645 = vmatmul.f32.gmra.mxu3 %v1496_v20  ;;  %v1497_v17 = vsub.f32 %v1495_v43, %v1496_v20 }
 0x234   :  { %v1454_v59 = vsel %vm770_vm4, %v1436_v44, 0 }
 0x235   :  { %v1407_v4 = vadd.f32 %v2722_v11, %v1396_v49  ;;  %v1498_v55 = vand.u32 4294901760, %v1497_v17  ;;  %v1501_v9 = vand.u32 4294901760, %v1454_v59 }
 0x237   :  { %v1423_v26 = vrot.slane %v1407_v4, 2  ;;  %1499 = vmatmul.f32.gmra.mxu0 %v1498_v55  ;;  %1557 = vmatmul.f32.gmra.mxu1 %v1501_v9  ;;  %v1502_v16 = vsub.f32 %v1454_v59, %v1501_v9 }
 0x239   :  { %v1424_v12 = vsel %vm754_vm3, %v1421_v10, %v1423_v26  ;;  %v1432_v3 = vsel %vm754_vm3, %v1423_v26, %v1414_v18  ;;  %1601 = vmatmul.f32.gmra.mxu2 %v1502_v16  ;;  %v1503_v34 = vand.u32 4294901760, %v1502_v16 }
 0x23a   :  { %v1437_v23 = vmax.f32 %v1406_v41, %v1424_v12  ;;  %v1438_v48 = vmax.f32 %v1407_v4, %v1432_v3 }
 0x23b   :  { %1650 = vmatmul.f32.gmra.mxu3 %v1503_v34  ;;  %v1504_v27 = vsub.f32 %v1502_v16, %v1503_v34 }
 0x23c   :  { %v1460_v11 = vsel %vm770_vm4, %v1438_v48, 0  ;;  %v1457_v8 = vsel %vm770_vm4, %v1437_v23, 0 }
 0x23d   :  { %v1505_v52 = vand.u32 4294901760, %v1504_v27  ;;  %v1509_v30 = vand.u32 4294901760, %v1457_v8  ;;  %v1516_v42 = vand.u32 4294901760, %v1460_v11  ;;  %v1746_v27 = vlaneseq }
 0x23f   :  { %1506 = vmatmul.f32.gmra.mxu0 %v1505_v52  ;;  %1561 = vmatmul.f32.gmra.mxu1 %v1509_v30  ;;  %v1510_v60 = vsub.f32 %v1457_v8, %v1509_v30  ;;  %v1517_v1 = vsub.f32 %v1460_v11, %v1516_v42  ;;  %v2779_v52 = vand.u32 127, %v1746_v27 }
 0x241   :  { %1606 = vmatmul.f32.gmra.mxu2 %v1510_v60  ;;  %v1511_v38 = vand.u32 4294901760, %v1510_v60  ;;  %v1518_v50 = vand.u32 4294901760, %v1517_v1  ;;  %vm1748_vm5 = vcmp.ge.s32.totalorder %v2779_v52, 12  ;;  %vm1749_vm6 = vcmp.lt.s32.totalorder %v2779_v52, 18 }
 0x242   :  { %vm2783_vm8 = vmand %vm1748_vm5, %vm1749_vm6  ;;  %vm1793_vm5 = vcmask 40960   ;;  %vm1970_vm6 = vcmask 48128  }
 0x243   :  { %1656 = vmatmul.f32.gmra.mxu3 %v1511_v38  ;;  %v1512_v18 = vsub.f32 %v1510_v60, %v1511_v38  ;;  %v1519_v51 = vsub.f32 %v1517_v1, %v1518_v50 }
 0x245   :  { %v1513_v32 = vand.u32 4294901760, %v1512_v18  ;;  %v1520_v24 = vand.u32 4294901760, %v1519_v51 }
 0x247   :  { %1514 = vmatmul.f32.gmra.mxu0 %v1513_v32  ;;  %1564 = vmatmul.f32.gmra.mxu1 %v1516_v42 }
 0x249   :  { %1610 = vmatmul.f32.gmra.mxu2 %v1517_v1 }
 0x24b   :  { %1661 = vmatmul.f32.gmra.mxu3 %v1518_v50 }
 0x24f   :  { %1521 = vmatmul.f32.gmra.mxu0 %v1520_v24  ;;  %1724 = vmatmul.f32.vlgmr.msrb.gmra.mxu1 %v2738_v54 }
 0x257   :  { %1685 = vmatmul.f32.vlgmr.msrb.gmra.mxu0 %v2738_v54  ;;  %1727 = vmatmul.f32.gmra.mxu1 %v2750_v35 }
 0x25f   :  { %1688 = vmatmul.f32.gmra.mxu0 %v2750_v35  ;;  %1731 = vmatmul.f32.gmra.mxu1 %v1494_v6 }
 0x267   :  { %1692 = vmatmul.f32.gmra.mxu0 %v1494_v6  ;;  %1734 = vmatmul.f32.gmra.mxu1 %v1501_v9 }
 0x26f   :  { %1695 = vmatmul.f32.gmra.mxu0 %v1501_v9  ;;  %1738 = vmatmul.f32.gmra.mxu1 %v1509_v30 }
 0x277   :  { %1699 = vmatmul.f32.gmra.mxu0 %v1509_v30  ;;  %1741 = vmatmul.f32.gmra.mxu1 %v1516_v42 }
 0x27f   :  { %1702 = vmatmul.f32.gmra.mxu0 %v1516_v42 }
 0x29c   :  { %v1548_v22 = vpop.f32.mrf.mxu1 }
 0x2a4   :  { %v1485_v53 = vpop.f32.mrf.mxu0  ;;  %v1551_v2 = vpop.f32.mrf.mxu1 }
 0x2a5   :  { %v1589_v61 = vpop.f32.mrf.mxu2 }
 0x2a6   :  { %v1635_v39 = vpop.f32.mrf.mxu3 }
 0x2ac   :  { %v1492_v56 = vpop.f32.mrf.mxu0  ;;  %v1555_v57 = vpop.f32.mrf.mxu1 }
 0x2ad   :  { %v1593_v54 = vpop.f32.mrf.mxu2  ;;  %v1493_v45 = vadd.f32 %v2183_v63, %v1492_v56 }
 0x2ae   :  { %v1640_v58 = vpop.f32.mrf.mxu3 }
 0x2af   :  { %v1552_v14 = vadd.f32 %v1551_v2, %v1493_v45 }
 0x2b1   :  { %v1594_v20 = vadd.f32 %v1593_v54, %v1552_v14 }
 0x2b3   :  { %v1641_v44 = vadd.f32 %v1640_v58, %v1594_v20  ;;  %v2242_v58 = vmov 21  }
 0x2b4   :  { %v1500_v13 = vpop.f32.mrf.mxu0  ;;  %v1558_v47 = vpop.f32.mrf.mxu1  ;;  %2171 = vset.pattern.permute.xlu0 %v2242_v58 }
 0x2b5   :  { %v1598_v35 = vpop.f32.mrf.mxu2  ;;  %v2243_v13 = vmov 19  }
 0x2b6   :  { %v1646_v46 = vpop.f32.mrf.mxu3  ;;  %2169 = vset.pattern.permute.xlu2 %v2243_v13 }
 0x2bc   :  { %v1507_v40 = vpop.f32.mrf.mxu0  ;;  %v1562_v0 = vpop.f32.mrf.mxu1 }
 0x2bd   :  { %v1508_v19 = vadd.f32 %v2183_v63, %v1507_v40  ;;  %v1602_v7 = vpop.f32.mrf.mxu2  ;;  %v2246_v40 = vmov 22   ;;  %v2247_v0 = vmov 23  }
 0x2be   :  { %v1651_v36 = vpop.f32.mrf.mxu3 }
 0x2bf   :  { %v1559_v28 = vadd.f32 %v1558_v47, %v1508_v19  ;;  %v2244_v47 = vmov 18  }
 0x2c0   :  { %2168 = vset.pattern.permute.xlu1 %v2244_v47 }
 0x2c1   :  { %v1603_v37 = vadd.f32 %v1602_v7, %v1559_v28  ;;  %v2809_v7 = vld [vmem:[%s2893_s9] sm:$0x3f]  ;;  %s2248_s9 = smov 110  }
 0x2c2   :  { %v1830_v45 = vrot.slane %v2809_v7, 4 }
 0x2c3   :  { %v1652_v21 = vadd.f32 %v1651_v36, %v1603_v37  ;;  %v1806_v36 = vrot.slane %v2809_v7, 1 }
 0x2c4   :  { %v1515_v62 = vpop.f32.mrf.mxu0  ;;  %v1565_v41 = vpop.f32.mrf.mxu1 }
 0x2c5   :  { %v1607_v33 = vpop.f32.mrf.mxu2 }
 0x2c6   :  { %v1657_v29 = vpop.f32.mrf.mxu3  ;;  %v1822_v33 = vrot.slane %v2809_v7, 3 }
 0x2cc   :  { %v1522_v6 = vpop.f32.mrf.mxu0  ;;  %v1725_v25 = vpop.f32.mrf.mxu1 }
 0x2cd   :  { %v1523_v10 = vadd.f32 %v2183_v63, %v1522_v6  ;;  %v2245_v63 = vmov 20  }
 0x2cf   :  { %v2775_v43 = vadd.f32 %v1565_v41, %v1523_v10 }
 0x2d4   :  { %v1686_v15 = vpop.f32.mrf.mxu0  ;;  %v1728_v5 = vpop.f32.mrf.mxu1 }
 0x2dc   :  { %v1689_v31 = vpop.f32.mrf.mxu0  ;;  %v1732_v49 = vpop.f32.mrf.mxu1 }
 0x2dd   :  { %v1690_v17 = vadd.f32 %v1689_v31, %v1641_v44 }
 0x2df   :  { %v1729_v59 = vadd.f32 %v1728_v5, %v1690_v17  ;;  %v1838_v5 = vrot.slane %v2809_v7, 5 }
 0x2e1   :  { %v1752_v4 = vsub.f32 0.0, %v1729_v59 }
 0x2e3   :  { %v1753_v55 = vmul.f32 1.442695, %v1752_v4 }
 0x2e4   :  { %v1693_v9 = vpop.f32.mrf.mxu0  ;;  %v1735_v26 = vpop.f32.mrf.mxu1 }
 0x2e5   :  { %2185 = vpow2.f32 %v1753_v55 }
 0x2eb   :  { %v2186_v16 = vpop.eup %2185 }
 0x2ec   :  { %v1755_v12 = vadd.f32 1.0, %v2186_v16  ;;  %v1696_v3 = vpop.f32.mrf.mxu0  ;;  %v1739_v34 = vpop.f32.mrf.mxu1 }
 0x2ed   :  { %v1697_v23 = vadd.f32 %v1696_v3, %v1652_v21  ;;  %v1814_v21 = vrot.slane %v2809_v7, 2 }
 0x2ee   :  { %2187 = vrcp.f32 %v1755_v12  ;;  %v1767_v60 = vand.u32 2147483648, %v1755_v12  ;;  %v1765_v1 = vand.u32 2147483647, %v1755_v12  ;;  %vm1761_vm9 = vweird.f32 %v1755_v12 }
 0x2ef   :  { %v2777_v48 = vadd.f32 %v1735_v26, %v1697_v23  ;;  %2189 = vtanh.f32 %v1729_v59 }
 0x2f0   :  { %v1768_v50 = vor.u32 1.1754944e-38, %v1767_v60  ;;  %vm1766_vm11 = vcmp.eq.f32.partialorder %v1765_v1, 8.507059e+37 }
 0x2f4   :  { %v2188_v11 = vpop.eup %2187  ;;  %v1700_v8 = vpop.f32.mrf.mxu0 }
 0x2f5   :  { %v1757_v30 = vmul.f32 %v2188_v11, %v1755_v12  ;;  %vm1762_vm7 = vweird.f32 %v2188_v11  ;;  %v2190_v24 = vpop.eup %2189 }
 0x2f6   :  { %vm1763_vm10 = vmor %vm1761_vm9, %vm1762_vm7  ;;  %vm2124_vm7 = vcmp.lt.s32.totalorder %v2779_v52, 6  ;;  %vm2137_vm9 = vcmask 51200  }
 0x2f7   :  { %v1758_v42 = vsub.f32 1.0, %v1757_v30 }
 0x2f9   :  { %v1759_v38 = vmul.f32 %v2188_v11, %v1758_v42 }
 0x2fb   :  { %v1760_v32 = vadd.f32 %v2188_v11, %v1759_v38 }
 0x2fd   :  { %v1764_v51 = vsel %vm1763_vm10, %v2188_v11, %v1760_v32 }
 0x2fe   :  { %v1769_v22 = vsel %vm1766_vm11, %v1768_v50, %v1764_v51 }
 0x2ff   :  { %v1771_v53 = vsel %vm2783_vm8, %v2190_v24, %v1769_v22 }
 0x300   :  { %1774 = vrot.lane.b32.xlu0 %v1771_v53, %s2239_s8  ;;  %v1772_v39 = vmul.f32 0.0, %v1771_v53 }
 0x372   :  { %v1775_v2 = vpop.permute.xlu0 %1774 }
 0x373   :  { %v1777_v61 = vmul.f32 %v1775_v2, %v1771_v53 }
 0x375   :  { %1779 = vrot.lane.b32.xlu0 %v1777_v61, %s2240_s23  ;;  %v1611_v61 = vpop.f32.mrf.mxu2 }
 0x3e7   :  { %v1780_v56 = vpop.permute.xlu0 %1779 }
 0x3e8   :  { %v2791_v57 = vadd.f32 %v1780_v56, %v1772_v39  ;;  %v1612_v39 = vadd.f32 %v1611_v61, %v2775_v43  ;;  %v1662_v56 = vpop.f32.mrf.mxu3 }
 0x3ea   :  { %2191 = vtanh.f32 %v2791_v57 }
 0x3f0   :  { %v2192_v54 = vpop.eup %2191 }
 0x3f1   :  { %1785 = vrot.lane.b32.xlu1 %v2192_v54, %s2241_s24  ;;  %v1663_v54 = vadd.f32 %v1662_v56, %v1612_v39 }
 0x463   :  { %v1786_v35 = vpop.permute.xlu1 %1785 }
 0x464   :  { %v2796_v46 = vmul.f32 %v1786_v35, %v1771_v53 }
 0x466   :  { %1819 = vperm.xlu0 %2171, %v2796_v46   ;;  %1802 = vperm.xlu2 %2169, %v2796_v46  }
 0x467   :  { %1796 = vperm.xlu1 %2168, %v2796_v46  }
 0x46e   :  { %2170 = vset.pattern.permute.xlu2 %v2245_v63  ;;  %2176 = vset.pattern.permute.xlu0 %v2245_v63  ;;  %v1742_v63 = vpop.f32.mrf.mxu1 }
 0x46f   :  { %2172 = vset.pattern.permute.xlu1 %v2246_v40  ;;  %1811 = vperm.xlu2 %2170, %v2796_v46  }
 0x470   :  { %1827 = vperm.xlu1 %2172, %v2796_v46  }
 0x477   :  { %2173 = vset.pattern.permute.xlu2 %v2247_v0 }
 0x478   :  { %1835 = vperm.xlu2 %2173, %v2796_v46   ;;  %2174 = vset.pattern.permute.xlu1 %v2244_v47 }
 0x480   :  { %2175 = vset.pattern.permute.xlu2 %v2243_v13 }
 0x4c0   :  { %v1803_v19 = vpop.permute.xlu2 %1802 }
 0x4c1   :  { %v1808_v41 = vmul.f32 %v1806_v36, %v1803_v19 }
 0x4c9   :  { %v1812_v28 = vpop.permute.xlu2 %1811 }
 0x4ca   :  { %v1816_v25 = vmul.f32 %v1814_v21, %v1812_v28 }
 0x4d2   :  { %v1836_v20 = vpop.permute.xlu2 %1835 }
 0x4d3   :  { %v1840_v17 = vmul.f32 %v1838_v5, %v1836_v20 }
 0x4d8   :  { %v1820_v6 = vpop.permute.xlu0 %1819 }
 0x4d9   :  { %v1797_v37 = vpop.permute.xlu1 %1796  ;;  %v1824_v14 = vmul.f32 %v1822_v33, %v1820_v6 }
 0x4da   :  { %v1799_v62 = vmul.f32 %v1797_v37, %v2809_v7 }
 0x4dc   :  { %v1800_v29 = vadd.f32 %v1799_v62, %v2777_v48 }
 0x4de   :  { %v1809_v10 = vadd.f32 %v1808_v41, %v1800_v29 }
 0x4e0   :  { %v1817_v15 = vadd.f32 %v1816_v25, %v1809_v10 }
 0x4e2   :  { %v1825_v44 = vadd.f32 %v1824_v14, %v1817_v15  ;;  %v1828_v31 = vpop.permute.xlu1 %1827 }
 0x4e3   :  { %v1832_v49 = vmul.f32 %v1830_v45, %v1828_v31 }
 0x4e5   :  { %v1833_v59 = vadd.f32 %v1832_v49, %v1825_v44 }
 0x4e7   :  { %v1841_v4 = vadd.f32 %v1840_v17, %v1833_v59 }
 0x4e9   :  { %v1843_v55 = vsub.f32 0.0, %v1841_v4 }
 0x4eb   :  { %v1844_v9 = vmul.f32 1.442695, %v1843_v55 }
 0x4ed   :  { %2193 = vpow2.f32 %v1844_v9 }
 0x4f3   :  { %v2194_v26 = vpop.eup %2193 }
 0x4f4   :  { %v1846_v16 = vadd.f32 1.0, %v2194_v26 }
 0x4f6   :  { %2195 = vrcp.f32 %v1846_v16  ;;  %v1858_v23 = vand.u32 2147483648, %v1846_v16  ;;  %v1856_v27 = vand.u32 2147483647, %v1846_v16  ;;  %vm1852_vm13 = vweird.f32 %v1846_v16 }
 0x4f7   :  { %2197 = vtanh.f32 %v1841_v4 }
 0x4f8   :  { %v1859_v8 = vor.u32 1.1754944e-38, %v1858_v23  ;;  %vm1857_vm15 = vcmp.eq.f32.partialorder %v1856_v27, 8.507059e+37 }
 0x4fc   :  { %v2196_v12 = vpop.eup %2195 }
 0x4fd   :  { %v1848_v3 = vmul.f32 %v2196_v12, %v1846_v16  ;;  %vm1853_vm12 = vweird.f32 %v2196_v12  ;;  %v2198_v42 = vpop.eup %2197 }
 0x4fe   :  { %vm1854_vm14 = vmor %vm1852_vm13, %vm1853_vm12 }
 0x4ff   :  { %v1849_v34 = vsub.f32 1.0, %v1848_v3 }
 0x501   :  { %v1850_v48 = vmul.f32 %v2196_v12, %v1849_v34 }
 0x503   :  { %v1851_v11 = vadd.f32 %v2196_v12, %v1850_v48 }
 0x505   :  { %v1855_v30 = vsel %vm1854_vm14, %v2196_v12, %v1851_v11 }
 0x506   :  { %v1860_v60 = vsel %vm1857_vm15, %v1859_v8, %v1855_v30 }
 0x507   :  { %v1862_v38 = vsel %vm2783_vm8, %v2198_v42, %v1860_v60 }
 0x508   :  { %1865 = vrot.lane.b32.xlu1 %v1862_v38, %s2239_s8  ;;  %v1863_v50 = vmul.f32 %v1862_v38, %v2791_v57  ;;  %v1703_v57 = vpop.f32.mrf.mxu0 }
 0x509   :  { %v1704_v13 = vadd.f32 %v1703_v57, %v1663_v54 }
 0x57a   :  { %v1866_v1 = vpop.permute.xlu1 %1865 }
 0x57b   :  { %v1868_v32 = vmul.f32 %v1866_v1, %v1862_v38 }
 0x57d   :  { %1870 = vrot.lane.b32.xlu2 %v1868_v32, %s2240_s23 }
 0x5d7   :  { %v1871_v51 = vpop.permute.xlu2 %1870 }
 0x5d8   :  { %v2833_v24 = vadd.f32 %v1871_v51, %v1863_v50 }
 0x5da   :  { %2199 = vtanh.f32 %v2833_v24 }
 0x5e0   :  { %v2200_v22 = vpop.eup %2199 }
 0x5e1   :  { %1876 = vrot.lane.b32.xlu0 %v2200_v22, %s2241_s24 }
 0x653   :  { %v1877_v53 = vpop.permute.xlu0 %1876 }
 0x654   :  { %v2837_v2 = vmul.f32 %v1877_v53, %v1862_v38 }
 0x656   :  { %1898 = vperm.xlu0 %2176, %v2837_v2   ;;  %1892 = vperm.xlu2 %2175, %v2837_v2  }
 0x657   :  { %1886 = vperm.xlu1 %2174, %v2837_v2  }
 0x65e   :  { %2178 = vset.pattern.permute.xlu2 %v2246_v40  ;;  %2180 = vset.pattern.permute.xlu0 %v2247_v0 }
 0x65f   :  { %2177 = vset.pattern.permute.xlu1 %v2242_v58  ;;  %1910 = vperm.xlu2 %2178, %v2837_v2   ;;  %v1743_v58 = vadd.f32 %v1742_v63, %v1704_v13 }
 0x660   :  { %1904 = vperm.xlu1 %2177, %v2837_v2  }
 0x668   :  { %2179 = vset.pattern.permute.xlu1 %v2247_v0 }
 0x669   :  { %1916 = vperm.xlu1 %2179, %v2837_v2  }
 0x6b0   :  { %v1893_v40 = vpop.permute.xlu2 %1892 }
 0x6b1   :  { %v1895_v28 = vmul.f32 %v1893_v40, %v1806_v36 }
 0x6b9   :  { %v1911_v6 = vpop.permute.xlu2 %1910 }
 0x6ba   :  { %v1913_v10 = vmul.f32 %v1911_v6, %v1830_v45 }
 0x6c8   :  { %v1899_v0 = vpop.permute.xlu0 %1898 }
 0x6c9   :  { %v1887_v47 = vpop.permute.xlu1 %1886  ;;  %v1901_v43 = vmul.f32 %v1899_v0, %v1814_v21 }
 0x6ca   :  { %v1889_v35 = vmul.f32 %v1887_v47, %v2809_v7  ;;  %v2184_v47 = vld [vmem:[%s2895_s11] ss:$0 sm:$0xff]  ;;  %s2249_s11 = smov [#allocation3]  }
 0x6cb   :  { %s2144_s29 = sshll.u32 %s2249_s11, 4  ;;  %s2145_s29 = int_to_ptr.vmem [resolvable:$true] %s2144_s29 }
 0x6cc   :  { %v1890_v19 = vadd.f32 %v1889_v35, %v1743_v58 }
 0x6ce   :  { %v1896_v37 = vadd.f32 %v1895_v28, %v1890_v19 }
 0x6d0   :  { %v1902_v29 = vadd.f32 %v1901_v43, %v1896_v37 }
 0x6d2   :  { %v1905_v62 = vpop.permute.xlu1 %1904 }
 0x6d3   :  { %v1907_v41 = vmul.f32 %v1905_v62, %v1822_v33 }
 0x6d5   :  { %v1908_v25 = vadd.f32 %v1907_v41, %v1902_v29 }
 0x6d7   :  { %v1914_v15 = vadd.f32 %v1913_v10, %v1908_v25 }
 0x6db   :  { %v1917_v14 = vpop.permute.xlu1 %1916 }
 0x6dc   :  { %v1919_v36 = vmul.f32 %v1917_v14, %v1838_v5 }
 0x6de   :  { %v1920_v20 = vadd.f32 %v1919_v36, %v1914_v15 }
 0x6e0   :  { %v1922_v44 = vsub.f32 0.0, %v1920_v20 }
 0x6e2   :  { %v1923_v31 = vmul.f32 1.442695, %v1922_v44 }
 0x6e4   :  { %2201 = vpow2.f32 %v1923_v31 }
 0x6ea   :  { %v2202_v49 = vpop.eup %2201 }
 0x6eb   :  { %v1925_v21 = vadd.f32 1.0, %v2202_v49 }
 0x6ed   :  { %2203 = vrcp.f32 %v1925_v21  ;;  %v1937_v4 = vand.u32 2147483648, %v1925_v21  ;;  %v1935_v45 = vand.u32 2147483647, %v1925_v21  ;;  %vm1931_vm1 = vweird.f32 %v1925_v21 }
 0x6ee   :  { %2205 = vtanh.f32 %v1920_v20 }
 0x6ef   :  { %v1938_v7 = vor.u32 1.1754944e-38, %v1937_v4  ;;  %vm1936_vm4 = vcmp.eq.f32.partialorder %v1935_v45, 8.507059e+37 }
 0x6f3   :  { %v2204_v17 = vpop.eup %2203 }
 0x6f4   :  { %v1927_v33 = vmul.f32 %v2204_v17, %v1925_v21  ;;  %vm1932_vm0 = vweird.f32 %v2204_v17  ;;  %v2206_v26 = vpop.eup %2205 }
 0x6f5   :  { %vm1933_vm2 = vmor %vm1931_vm1, %vm1932_vm0 }
 0x6f6   :  { %v1928_v59 = vsub.f32 1.0, %v1927_v33 }
 0x6f8   :  { %v1929_v55 = vmul.f32 %v2204_v17, %v1928_v59 }
 0x6fa   :  { %v1930_v9 = vadd.f32 %v2204_v17, %v1929_v55 }
 0x6fc   :  { %v1934_v5 = vsel %vm1933_vm2, %v2204_v17, %v1930_v9 }
 0x6fd   :  { %v1939_v16 = vsel %vm1936_vm4, %v1938_v7, %v1934_v5 }
 0x6fe   :  { %v1941_v12 = vsel %vm2783_vm8, %v2206_v26, %v1939_v16 }
 0x6ff   :  { %1944 = vrot.lane.b32.xlu2 %v1941_v12, %s2239_s8  ;;  %v1942_v48 = vmul.f32 %v1941_v12, %v2833_v24 }
 0x707   :  { %1790 = vrot.lane.b32.xlu2 %v2796_v46, %s2248_s9  ;;  %v1965_v46 = vld [vmem:[%s2894_s10] sm:$0x3f] }
 0x708   :  { %v1975_v30 = vsel %vm754_vm3, %v1965_v46, 0  ;;  %vm2123_vm3 = vcmp.ge.s32.totalorder %v2779_v52, 3 }
 0x709   :  { %v1992_v42 = vand.u32 4294901760, %v1975_v30  ;;  %vm2125_vm8 = vmand %vm2123_vm3, %vm2124_vm7 }
 0x70b   :  { %1993 = vmatpush.msra.mxu2 %v1992_v42  ;;  %v2019_v60 = vsub.f32 %v1975_v30, %v1992_v42 }
 0x70d   :  { %v2020_v38 = vand.u32 4294901760, %v2019_v60  ;;  %2046 = vmatpush.msrb.mxu2 %v2019_v60 }
 0x70f   :  { %v2021_v1 = vsub.f32 %v2019_v60, %v2020_v38 }
 0x711   :  { %v2022_v32 = vand.u32 4294901760, %v2021_v1 }
 0x713   :  { %2023 = vmatpush.msra.mxu3 %v2022_v32 }
 0x715   :  { %2069 = vmatpush.msrb.mxu3 %v1992_v42 }
 0x759   :  { %v1945_v3 = vpop.permute.xlu2 %1944 }
 0x75a   :  { %v1947_v34 = vmul.f32 %v1945_v3, %v1941_v12 }
 0x75c   :  { %1949 = vrot.lane.b32.xlu0 %v1947_v34, %s2240_s23 }
 0x761   :  { %v1791_v23 = vpop.permute.xlu2 %1790 }
 0x762   :  { %1794 = vst.msk [vmem:[#allocation2] sm:$0x1] %vm1793_vm5, %v1791_v23 }
 0x764   :  { %1881 = vrot.lane.b32.xlu0 %v2837_v2, %s2248_s9 }
 0x7ce   :  { %v1950_v27 = vpop.permute.xlu0 %1949 }
 0x7cf   :  { %v1952_v18 = vadd.f32 %v1950_v27, %v1942_v48 }
 0x7d1   :  { %2207 = vtanh.f32 %v1952_v18 }
 0x7d6   :  { %v1882_v11 = vpop.permute.xlu0 %1881 }
 0x7d7   :  { %v2208_v8 = vpop.eup %2207  ;;  %1884 = vst.msk [vmem:[#allocation2 + $0x1] sm:$0x1] %vm1793_vm5, %v1882_v11 }
 0x7d8   :  { %1955 = vrot.lane.b32.xlu1 %v2208_v8, %s2241_s24 }
 0x84a   :  { %v1956_v50 = vpop.permute.xlu1 %1955 }
 0x84b   :  { %v1958_v51 = vmul.f32 %v1956_v50, %v1941_v12 }
 0x84d   :  { %1960 = vrot.lane.b32.xlu1 %v1958_v51, %s2248_s9 }
 0x8bf   :  { %v1961_v24 = vpop.permute.xlu1 %1960 }
 0x8c0   :  { %1963 = vst.msk [vmem:[#allocation2 + $0x2] sm:$0x1] %vm1793_vm5, %v1961_v24 }
 0x8c7   :  { %v1964_v22 = vld [vmem:[#allocation2] sm:$0x7] }
 0x8c8   :  { %v1972_v53 = vsel %vm1970_vm6, %v1964_v22, 0 }
 0x8c9   :  { %v1994_v2 = vand.u32 4294901760, %v1972_v53 }
 0x8cb   :  { %v1995_v61 = vsub.f32 %v1972_v53, %v1994_v2  ;;  %2025 = vmatmul.f32.vlgmr.msra.gmra.mxu3 %v1994_v2 }
 0x8cc   :  { %2117 = vmatpush.msra.mxu3 %v1992_v42 }
 0x8cd   :  { %v1996_v39 = vand.u32 4294901760, %v1995_v61 }
 0x8cf   :  { %v1997_v56 = vsub.f32 %v1995_v61, %v1996_v39 }
 0x8d1   :  { %v1998_v57 = vand.u32 4294901760, %v1997_v56 }
 0x8d3   :  { %1999 = vmatmul.f32.vlgmr.msra.gmra.mxu2 %v1998_v57  ;;  %2073 = vmatmul.f32.vlgmr.msrb.gmra.mxu3 %v1996_v39 }
 0x8d4   :  { %2095 = vmatpush.msra.mxu2 %v2020_v38 }
 0x8db   :  { %2049 = vmatmul.f32.vlgmr.msrb.gmra.mxu2 %v1995_v61  ;;  %2119 = vmatmul.f32.vlgmr.msra.gmra.mxu3 %v1994_v2 }
 0x8e3   :  { %2097 = vmatmul.f32.vlgmr.msra.gmra.mxu2 %v1994_v2 }
 0x94e   :  { %v2026_v54 = vpop.f32.mrf.mxu3 }
 0x956   :  { %v2000_v13 = vpop.f32.mrf.mxu2  ;;  %v2074_v63 = vpop.f32.mrf.mxu3 }
 0x957   :  { %v2001_v35 = vadd.f32 %v2184_v47, %v2000_v13 }
 0x959   :  { %v2027_v40 = vadd.f32 %v2026_v54, %v2001_v35 }
 0x95e   :  { %v2050_v58 = vpop.f32.mrf.mxu2  ;;  %v2120_v62 = vpop.f32.mrf.mxu3 }
 0x95f   :  { %v2051_v19 = vadd.f32 %v2050_v58, %v2027_v40 }
 0x961   :  { %v2075_v28 = vadd.f32 %v2074_v63, %v2051_v19 }
 0x966   :  { %v2098_v0 = vpop.f32.mrf.mxu2 }
 0x967   :  { %v2099_v37 = vadd.f32 %v2098_v0, %v2075_v28 }
 0x969   :  { %v2121_v43 = vadd.f32 %v2120_v62, %v2099_v37 }
 0x96b   :  { %v2127_v41 = vand.u32 2147483647, %v2121_v43  ;;  %v2126_v15 = vmax.f32 %v2121_v43, 0.0 }
 0x96d   :  { %v2128_v29 = vsub.f32 0.0, %v2127_v41 }
 0x96f   :  { %v2129_v6 = vmul.f32 1.442695, %v2128_v29 }
 0x971   :  { %2209 = vpow2.f32 %v2129_v6 }
 0x977   :  { %v2210_v25 = vpop.eup %2209 }
 0x978   :  { %v2131_v10 = vadd.f32 1.0, %v2210_v25 }
 0x97a   :  { %2211 = vlog2.f32 %v2131_v10 }
 0x980   :  { %v2212_v14 = vpop.eup %2211 }
 0x981   :  { %v2133_v36 = vmul.f32 0.6931472, %v2212_v14 }
 0x983   :  { %v2134_v20 = vadd.f32 %v2133_v36, %v2126_v15 }
 0x985   :  { %v2135_v44 = vadd.f32 0.001, %v2134_v20 }
 0x987   :  { %v2136_v31 = vsel %vm2125_vm8, %v2135_v44, %v2121_v43 }
 0x988   :  { %2138 = vst.msk [vmem:[#allocation3] sm:$0x7] %vm2137_vm9, %v2136_v31 }
 0x989   :  { %2149 = dma.vmem_to_hbm [thread:$0]  %s2145_s29, 64, %s2147_s14, [#allocation4]  }
 0x98a   :  { %2237 = dma.done.wait [#allocation4], 64  }
 0x98b   :  { %2238 = vsyncadd [#allocation4], 4294967232 }
 0x98c   :  { %2154 = vsyncpa [#allocation4], 1 }

</bundles_post_ra>
